<compile_context>
chip_gen: v7x
topology: tpu7x:2x2x1
jax: 0.10.0
libtpu: 0.0.40
codegen_flags: <defaults>
</compile_context>

<pallas_src>
import functools
import math

import jax
import jax.numpy as jnp
from jax.experimental import pallas as pl
from jax.experimental.pallas import tpu as pltpu


def _attention_kernel(q_ref, k_ref, v_ref, o_ref, acc_ref, *, compute_dtype):
    j = pl.program_id(1)

    @pl.when(j == 0)
    def _():
        acc_ref[...] = jnp.zeros_like(acc_ref)

    q = q_ref[...].astype(compute_dtype)   # (B, tm, D)
    k = k_ref[...].astype(compute_dtype)   # (B, tn, D)
    v = v_ref[...].astype(compute_dtype)   # (B, tn, Dv)

    inv_sqrt_d = 1.0 / math.sqrt(q_ref.shape[-1])

    # scores = bmm(Q, K^T) / sqrt(D): contract D (last dim of BOTH operands) -> MXU-native.
    scores = jnp.einsum(
        "bmd,bnd->bmn", q, k, preferred_element_type=jnp.float32
    ) * inv_sqrt_d                                            # (B, tm, tn), f32

    # F.softmax with no `dim` on a 3-D tensor is softmax over dim=0 (the batch axis).
    # The batch axis is never tiled, so each (m, n) tile is self-contained.
    m0 = jnp.max(scores, axis=0, keepdims=True)
    e = jnp.exp(scores - m0)
    denom = jnp.sum(e, axis=0, keepdims=True)
    w = e * pl.reciprocal(denom, approx=True)                 # (B, tm, tn), f32

    # TODO(synk): nn.Dropout on the weights is stochastic at train time; identity here (eval / p=0).

    # acc += weights @ V (batched, contract the key axis); accumulated across N tiles.
    acc_ref[...] += jnp.einsum(
        "bmn,bnd->bmd", w.astype(compute_dtype), v, preferred_element_type=jnp.float32
    )

    @pl.when(j == pl.num_programs(1) - 1)
    def _():
        o_ref[...] = acc_ref[...].astype(o_ref.dtype)


def _pick_tile(extent: int, target: int) -> int:
    """Largest divisor of `extent` that is <= target and sublane-friendly (mult of 8),
    falling back to the full extent."""
    if extent <= target:
        return extent
    for t in range(target, 0, -1):
        if extent % t == 0 and t % 8 == 0:
            return t
    return extent


def dot_product_attention(Q, K, V, dropout: float = 0.0, *,
                          tm: int = 256, tn: int = 256,
                          compute_dtype=jnp.float32):
    """Q: (B, M, D), K: (N, D, B), V: (B, N, Dv) -> (B, M, Dv).

    `compute_dtype=jnp.bfloat16` is an optional ~3x MXU-throughput knob on v6e/v7x
    (accumulation stays f32); default keeps f32 to match PyTorch numerics.
    """
    del dropout  # identity — see TODO in the kernel

    # PyTorch `K.T` on the (N, D, B) tensor gives (B, D, N). Instead rearrange to
    # (B, N, D) (pure layout glue) so the kernel contracts D directly on the MXU.
    Kr = jnp.transpose(K, (2, 0, 1))

    B, M, D = Q.shape
    Bk, N, Dk = Kr.shape
    Bv, Nv, Dv = V.shape
    assert (B, D) == (Bk, Dk) and (B, N) == (Bv, Nv), "shape mismatch"

    tm = _pick_tile(M, tm)
    tn = _pick_tile(N, tn)
    grid = (M // tm, N // tn)

    kernel = functools.partial(_attention_kernel, compute_dtype=compute_dtype)

    return pl.pallas_call(
        kernel,
        out_shape=jax.ShapeDtypeStruct((B, M, Dv), Q.dtype),
        grid_spec=pltpu.PrefetchScalarGridSpec(
            num_scalar_prefetch=0,
            grid=grid,
            in_specs=[
                pl.BlockSpec((B, tm, D), lambda i, j: (0, i, 0)),    # Q tile
                pl.BlockSpec((B, tn, D), lambda i, j: (0, j, 0)),    # K tile (as (B, N, D))
                pl.BlockSpec((B, tn, Dv), lambda i, j: (0, j, 0)),   # V tile
            ],
            out_specs=pl.BlockSpec((B, tm, Dv), lambda i, j: (0, i, 0)),
            scratch_shapes=[pltpu.VMEM((B, tm, Dv), jnp.float32)],   # accumulator
        ),
        compiler_params=pltpu.CompilerParams(
            # M tiles are independent -> megacore-shard on v7x; N is the reduction axis
            # for the weights @ V accumulation.
            dimension_semantics=("parallel", "arbitrary"),
            # Explicit, modest limit: safe on v5e/v6e (128 MiB) and v7x (64 MiB physical).
            vmem_limit_bytes=32 * 1024 * 1024,
        ),
    )(Q, Kr, V)


if __name__ == "__main__":
    key = jax.random.PRNGKey(0)
    kq, kk, kv = jax.random.split(key, 3)

    # Shapes consistent with the module: Q (B, M, D), K (N, D, B) so K.T -> (B, D, N),
    # V (B, N, Dv). Lane dims D/Dv are 128-multiples; M, N sized so the grid really tiles.
    B, M, N, D, Dv = 2, 256, 256, 128, 128
    Q = jax.random.normal(kq, (B, M, D), dtype=jnp.float32)
    K = jax.random.normal(kk, (N, D, B), dtype=jnp.float32)   # so PyTorch K.T -> (B, D, N)
    V = jax.random.normal(kv, (B, N, Dv), dtype=jnp.float32)

    out = dot_product_attention(Q, K, V, dropout=0.0, tm=128, tn=128)  # grid (2, 2)
    jax.block_until_ready(out)

    # Pure-JAX reference with identical semantics.
    Kt = jnp.transpose(K, (2, 1, 0))                          # PyTorch K.T (full reverse)
    scores = jnp.einsum("bmd,bdn->bmn", Q, Kt) / math.sqrt(D)
    weights = jax.nn.softmax(scores, axis=0)                  # F.softmax default dim for 3-D: 0
    ref = jnp.einsum("bmn,bnd->bmd", weights, V)

    assert out.shape == (B, M, Dv)
    # Tolerance leaves headroom for pl.reciprocal(approx=True) in the softmax denominator.
    assert jnp.allclose(out, ref, atol=2e-2, rtol=2e-2), "mismatch vs reference"
    print("KERNEL_OK")
</pallas_src>

<mosaic_0001>
module attributes {stable_mosaic.version = 11 : i64} {
  func.func @_attention_kernel(%arg0: i32, %arg1: i32, %arg2: memref<2x128x128xf32, #tpu.memory_space<vmem>>, %arg3: memref<2x128x128xf32, #tpu.memory_space<vmem>>, %arg4: memref<2x128x128xf32, #tpu.memory_space<vmem>>, %arg5: memref<2x128x128xf32, #tpu.memory_space<vmem>>, %arg6: memref<2x128x128xf32, #tpu.memory_space<vmem>>) attributes {dimension_semantics = [#tpu.dimension_semantics<parallel>, #tpu.dimension_semantics<arbitrary>], iteration_bounds = array<i64: 2, 2>, scalar_prefetch = 0 : i64, scratch_operands = 1 : i64, tpu.core_type = #tpu.core_type<tc>, window_params = [{transform_indices = @transform_0, window_bounds = array<i64: 2, 128, 128>}, {transform_indices = @transform_1, window_bounds = array<i64: 2, 128, 128>}, {transform_indices = @transform_2, window_bounds = array<i64: 2, 128, 128>}, {transform_indices = @transform_3, window_bounds = array<i64: 2, 128, 128>}]} {
    %c0_i32 = arith.constant 0 : i32
    %0 = arith.cmpi eq, %arg1, %c0_i32 : i32
    %1 = arith.extui %0 : i1 to i32
    %c0_i32_0 = arith.constant 0 : i32
    %2 = arith.cmpi ne, %1, %c0_i32_0 : i32
    scf.if %2 {
      %cst_20 = arith.constant 0.000000e+00 : f32
      %26 = vector.broadcast %cst_20 : f32 to vector<2x128x128xf32>
      %c0_21 = arith.constant 0 : index
      %c0_22 = arith.constant 0 : index
      %c0_23 = arith.constant 0 : index
      %27 = vector.load %arg6[%c0_21, %c0_22, %c0_23] : memref<2x128x128xf32, #tpu.memory_space<vmem>>, vector<2x128x128xf32>
      tpu.vector_store %arg6[%c0_21, %c0_22, %c0_23], %26 {strides = array<i32>} : memref<2x128x128xf32, #tpu.memory_space<vmem>>, vector<2x128x128xf32>,
    } else {
    }
    %c0 = arith.constant 0 : index
    %c0_1 = arith.constant 0 : index
    %c0_2 = arith.constant 0 : index
    %3 = vector.load %arg2[%c0, %c0_1, %c0_2] : memref<2x128x128xf32, #tpu.memory_space<vmem>>, vector<2x128x128xf32>
    %c0_3 = arith.constant 0 : index
    %c0_4 = arith.constant 0 : index
    %c0_5 = arith.constant 0 : index
    %4 = vector.load %arg3[%c0_3, %c0_4, %c0_5] : memref<2x128x128xf32, #tpu.memory_space<vmem>>, vector<2x128x128xf32>
    %c0_6 = arith.constant 0 : index
    %c0_7 = arith.constant 0 : index
    %c0_8 = arith.constant 0 : index
    %5 = vector.load %arg4[%c0_6, %c0_7, %c0_8] : memref<2x128x128xf32, #tpu.memory_space<vmem>>, vector<2x128x128xf32>
    "tpu.trace_start"() <{level = 10 : i32, message = "bmd,bnd->bmn"}> : () -> ()
    %cst = arith.constant dense<0.000000e+00> : vector<2x128x128xf32>
    %6 = tpu.matmul %3, %4, %cst {dimension_numbers = #tpu.dot_dimension_numbers<[2], [2], [1], [1], [0, 0, 0, 1, 1, 1], [0], [0]>} : vector<2x128x128xf32>, vector<2x128x128xf32>, vector<2x128x128xf32> -> vector<2x128x128xf32>
    "tpu.trace_stop"() : () -> ()
    %cst_9 = arith.constant 0.0883883461 : f32
    %7 = vector.broadcast %cst_9 : f32 to vector<2x128x128xf32>
    %8 = arith.mulf %6, %7 : vector<2x128x128xf32>
    %cst_10 = arith.constant dense<0xFF800000> : vector<128x128xf32>
    %9 = vector.multi_reduction <maximumf>, %8, %cst_10 [0] : vector<2x128x128xf32> to vector<128x128xf32>
    %10 = vector.shape_cast %9 : vector<128x128xf32> to vector<1x128x128xf32>
    %11 = vector.broadcast %10 : vector<1x128x128xf32> to vector<2x128x128xf32>
    %12 = arith.subf %8, %11 : vector<2x128x128xf32>
    %13 = math.exp %12 : vector<2x128x128xf32>
    %cst_11 = arith.constant dense<0.000000e+00> : vector<128x128xf32>
    %14 = vector.multi_reduction <add>, %13, %cst_11 [0] : vector<2x128x128xf32> to vector<128x128xf32>
    %15 = vector.shape_cast %14 : vector<128x128xf32> to vector<1x128x128xf32>
    %16 = tpu.reciprocal %15 {approx = true} : vector<1x128x128xf32> -> vector<1x128x128xf32>
    %17 = vector.broadcast %16 : vector<1x128x128xf32> to vector<2x128x128xf32>
    %18 = arith.mulf %13, %17 : vector<2x128x128xf32>
    %c0_12 = arith.constant 0 : index
    %c0_13 = arith.constant 0 : index
    %c0_14 = arith.constant 0 : index
    %19 = vector.load %arg6[%c0_12, %c0_13, %c0_14] : memref<2x128x128xf32, #tpu.memory_space<vmem>>, vector<2x128x128xf32>
    "tpu.trace_start"() <{level = 10 : i32, message = "bmn,bnd->bmd"}> : () -> ()
    %cst_15 = arith.constant dense<0.000000e+00> : vector<2x128x128xf32>
    %20 = tpu.matmul %18, %5, %cst_15 {dimension_numbers = #tpu.dot_dimension_numbers<[2], [1], [1], [2], [0, 0, 0, 1, 1, 2], [0], [0]>} : vector<2x128x128xf32>, vector<2x128x128xf32>, vector<2x128x128xf32> -> vector<2x128x128xf32>
    "tpu.trace_stop"() : () -> ()
    %21 = arith.addf %19, %20 : vector<2x128x128xf32>
    %c0_16 = arith.constant 0 : index
    %c0_17 = arith.constant 0 : index
    %c0_18 = arith.constant 0 : index
    %22 = vector.load %arg6[%c0_16, %c0_17, %c0_18] : memref<2x128x128xf32, #tpu.memory_space<vmem>>, vector<2x128x128xf32>
    tpu.vector_store %arg6[%c0_16, %c0_17, %c0_18], %21 {strides = array<i32>} : memref<2x128x128xf32, #tpu.memory_space<vmem>>, vector<2x128x128xf32>,
    %c1_i32 = arith.constant 1 : i32
    %23 = arith.cmpi eq, %arg1, %c1_i32 : i32
    %24 = arith.extui %23 : i1 to i32
    %c0_i32_19 = arith.constant 0 : i32
    %25 = arith.cmpi ne, %24, %c0_i32_19 : i32
    scf.if %25 {
      %c0_20 = arith.constant 0 : index
      %c0_21 = arith.constant 0 : index
      %c0_22 = arith.constant 0 : index
      %26 = vector.load %arg6[%c0_20, %c0_21, %c0_22] : memref<2x128x128xf32, #tpu.memory_space<vmem>>, vector<2x128x128xf32>
      %c0_23 = arith.constant 0 : index
      %c0_24 = arith.constant 0 : index
      %c0_25 = arith.constant 0 : index
      %27 = vector.load %arg5[%c0_23, %c0_24, %c0_25] : memref<2x128x128xf32, #tpu.memory_space<vmem>>, vector<2x128x128xf32>
      tpu.vector_store %arg5[%c0_23, %c0_24, %c0_25], %26 {strides = array<i32>} : memref<2x128x128xf32, #tpu.memory_space<vmem>>, vector<2x128x128xf32>,
    } else {
    }
    return
  }
  func.func @transform_0(%arg0: i32, %arg1: i32) -> (i32, i32, i32) {
    %c0_i32 = arith.constant 0 : i32
    %c0_i32_0 = arith.constant 0 : i32
    %c0_i32_1 = arith.constant 0 : i32
    return %c0_i32, %arg0, %c0_i32_0 : i32, i32, i32
  }
  func.func @transform_1(%arg0: i32, %arg1: i32) -> (i32, i32, i32) {
    %c0_i32 = arith.constant 0 : i32
    %c0_i32_0 = arith.constant 0 : i32
    %c0_i32_1 = arith.constant 0 : i32
    return %c0_i32, %arg1, %c0_i32_0 : i32, i32, i32
  }
  func.func @transform_2(%arg0: i32, %arg1: i32) -> (i32, i32, i32) {
    %c0_i32 = arith.constant 0 : i32
    %c0_i32_0 = arith.constant 0 : i32
    %c0_i32_1 = arith.constant 0 : i32
    return %c0_i32, %arg1, %c0_i32_0 : i32, i32, i32
  }
  func.func @transform_3(%arg0: i32, %arg1: i32) -> (i32, i32, i32) {
    %c0_i32 = arith.constant 0 : i32
    %c0_i32_0 = arith.constant 0 : i32
    %c0_i32_1 = arith.constant 0 : i32
    return %c0_i32, %arg0, %c0_i32_0 : i32, i32, i32
  }
}

</mosaic_0001>

<bundles_post_ra>
// kernel: tpu_custom_call.1
= control target key start
LH: loop header
LB: loop body
LE: loop exit
PB: predicated region body
PF: predicated region fallthrough
CT: control target
= control target key end

     0   :  { %8 = vsyncpa [#allocation4], 0  ;;  %s3076_s0 = inlined_call_operand.hbm [shape: f32[2,256,128], index: 0, kind: input, shape index: {}]   ;;  %s3077_s1 = inlined_call_operand.hbm [shape: f32[2,256,128], index: 1, kind: input, shape index: {}]   ;;  %s3078_s2 = inlined_call_operand.hbm [shape: f32[2,256,128], index: 2, kind: input, shape index: {}]   ;;  %s3079_s3 = inlined_call_operand.hbm [shape: f32[2,256,128], index: 3, kind: output, shape index: {}]  }
   0x1   :  { %10 = vsyncpa [#allocation4 + $0x1], 0 }
   0x2   :  { %11 = vsyncpa [#allocation7], 0 }
   0x3   :  { %13 = vsyncpa [#allocation7 + $0x1], 0 }
   0x4   :  { %14 = vsyncpa [#allocation5], 0 }
   0x5   :  { %16 = vsyncpa [#allocation5 + $0x1], 0  ;;  %s2522_s12 = smov 0   ;;  %s2524_s13 = smov 0  }
   0x6   :  { %s2526_s14 = smov 0   ;;  %s2528_s15 = smov 0  }
   0x7   :  { %s2530_s16 = smov 0   ;;  %s2532_s17 = smov 0  }
   0x8   :  { %s2534_s18 = smov 0   ;;  %s2536_s19 = smov 0  }
   0x9   :  { %s2538_s20 = smov 0   ;;  %s2540_s21 = smov 0  }
   0xa   :  { %s2542_s22 = smov 0  }
   0xb LB: > { %3087 = sst [smem:[#allocation24_spill]] %s2446_s15  ;;  %s2578_s23 = sadd.s32 4294967295, %s2474_s22   ;;  %s2474_s22 = sphi %s2542_s22, %s22_s22   ;;  %s2470_s21 = sphi %s2540_s21, %s3109_s21   ;;  %s2466_s20 = sphi %s2538_s20, %s3116_s20   ;;  %s2462_s19 = sphi %s2536_s19, %s3107_s19   ;;  %s2458_s18 = sphi %s2534_s18, %s3115_s18   ;;  %s2454_s17 = sphi %s2532_s17, %s3106_s17   ;;  %s2450_s16 = sphi %s2530_s16, %s3114_s16   ;;  %s2446_s15 = sphi %s2528_s15, %s3113_s15   ;;  %s2442_s14 = sphi %s2526_s14, %s3112_s14   ;;  %s2438_s13 = sphi %s2524_s13, %s3111_s13   ;;  %s2434_s12 = sphi %s2522_s12, %s3110_s12  }
   0xc   : > { %3088 = sst [smem:[#allocation25_spill]] %s2454_s17  ;;  %s1612_s24 = sadd.s32 4294967294, %s2474_s22  }
   0xd   : > { %3089 = sst [smem:[#allocation26_spill]] %s2470_s21  ;;  %s31_s25 = sadd.s32 1, %s2466_s20 }
   0xe   : > { %s34_s26 = sadd.s32 1, %s2470_s21  ;;  %p32_p0 = scmp.ge.s32.totalorder %s31_s25, 2 }
   0xf   : > { %s41_s27 = sadd.s32 1, %s2454_s17  ;;  %p48_p1 = scmp.ne.s32.totalorder %s2454_s17, %s2450_s16 }
  0x10   : > { %p49_p2 = scmp.eq.s32.totalorder %s2474_s22, 0  ;;  %s3118_s25 = smov (%p32_p0, %s31_s25), 0 }
  0x11   : > { %3090 = sst [smem:[#allocation27_spill]] %s3118_s25  ;;  %s3120_s26 = smov (!%p32_p0, %s34_s26), %s2470_s21 }
  0x12   : > { %p2595_p3 = por %p49_p2, %p48_p1  ;;  %p3080_p4 = scmp.ne.s32.totalorder %s2450_s16, %s2446_s15 }
  0x13   : > { %p36_p5 = scmp.ge.s32.totalorder %s3120_s26, 2  ;;  %p55_p6 = scmp.eq.s32.totalorder %s2578_s23, 0 }
  0x14   : > { %s64_s29 = ssub.s32 %s2466_s20, %s3118_s25  ;;  %s67_s30 = sadd.s32 1, %s2442_s14 }
  0x15   : > { %s3122_s26 = smov (%p36_p5, %s3120_s26), 0  ;;  %p2612_p7 = por %p55_p6, %p3080_p4 }
  0x16   : > { %3092 = sst [smem:[#allocation28_spill]] %s3122_s26  ;;  %p65_p8 = scmp.eq.s32.totalorder %s64_s29, 0 }
  0x17   : > { %s38_s5 = ssub.s32 %s2470_s21, %s3122_s26  ;;  %p74_p9 = scmp.ne.s32.totalorder %s2442_s14, %s2438_s13 }
  0x18   : > { %p39_p10 = scmp.eq.s32.totalorder %s38_s5, 0  ;;  %p80_p11 = scmp.ne.s32.totalorder %s2438_s13, %s2434_s12 }
  0x19   : > { %s2623_s6 = scalar_select %p65_p8, %s2442_s14, %s67_s30  }
  0x1a   : > { %s2626_s7 = scalar_select %p39_p10, %s2454_s17, %s41_s27  }
  0x1b   : > { %3094 = sst [smem:[#allocation29_spill]] %s2623_s6  ;;  %p2630_p12 = por %p74_p9, %p49_p2 }
  0x1c   : > { %3095 = sst [smem:[#allocation30_spill]] %s2626_s7  ;;  %p2636_p13 = por %p80_p11, %p55_p6 }
  0x1d   : > { %p130_p0 = scmp.eq.s32.totalorder %s2578_s23, 3  ;;  %p136_p5 = scmp.eq.s32.totalorder %s1612_s24, 3 }
  0x1e   : > { %p3099_p8 = scmp.ne.s32.totalorder %s2450_s16, %s2446_s15  ;;  %p1614_p2 = scmp.ge.s32.totalorder %s2474_s22, 4 }
  0x1f   : > { %p2644_p4 = por %p130_p0, %p48_p1 }
  0x20   : > { %p2651_p10 = por %p136_p5, %p3099_p8  ;;  %152 = sbr.rel (%p1614_p2) target bundleno = 78 (0x4e), region = 16 }
  0x22   : > { %s3100_s11 = scalar_select %p2651_p10, 1, 0 }
  0x24   : > { %3101 = sst [smem:[#allocation31_spill]] %s3100_s11 }
  0x27   : > { %s156_s12 = sand.u32 1, %s2454_s17   ;;  %s1642_s24 = sshll.u32 %s2470_s21, 11 }
  0x28   : > { %s1615_s27 = sshll.u32 %s156_s12, 8  ;;  %s166_s5 = scalar_lea.hbm %s3076_s0, %s1642_s24 }
  0x29   : > { %s2126_s26 = scalar_select %p2595_p3, [#allocation0], [#allocation18] }
  0x2a   : > { %s160_s25 = scalar_lea.vmem [#allocation3], %s1615_s27  ;;  %s2476_s11 = smov 4096  }
  0x2b   : > { %s179_s7 = sshll.u32 %s160_s25, 4  ;;  %s171_s6 = sld [smem:[%s2126_s26]]   ;;  %s180_s7 = int_to_ptr.vmem [resolvable:$true] %s179_s7 }
  0x2c   : > { %2127 = sst [smem:[#allocation11]] (%p2595_p3), %s2476_s11  ;;  %s2477_s17 = smov 2048  }
  0x2d   : > { %2128 = sst [smem:[#allocation11 + $0x1]] (%p2595_p3), %s2477_s17  ;;  %s2478_s21 = smov 16  }
  0x2e   : > { %2129 = sst [smem:[#allocation11 + $0x2]] (%p2595_p3), %s2478_s21  ;;  %s2479_s15 = smov 128  }
  0x2f   : > { %2130 = sst [smem:[#allocation11 + $0x3]] (%p2595_p3), %s2479_s15  ;;  %s2480_s27 = smov 8  }
  0x30   : > { %2131 = sst [smem:[#allocation11 + $0x4]] (%p2595_p3), %s2479_s15  ;;  %s157_s26 = scalar_lea.sflag [#allocation4], %s156_s12 }
  0x31   : > { %s1618_s24 = sshll.u32 %s171_s6, 26  ;;  %2132 = sst [smem:[#allocation11 + $0x5]] (%p2595_p3), %s2480_s27 }
  0x32   : > { %s1619_s25 = sadd.s32 134217728, %s1618_s24  ;;  %s2481_s29 = smov [#allocation10]  }
  0x33   : > { %2133 = dma.general (%p2595_p3), %s166_s5, 4096, %s180_s7, %s157_s26, %s2481_s29, [#allocation11], %s1619_s25, 0  }
  0x34   : > { %s202_s17 = sand.u32 1, %s2474_s22   ;;  %s204_s21 = sand.u32 1, %s2442_s14  }
  0x35   : > { %s1620_s15 = sshll.u32 %s204_s21, 8  ;;  %s1643_s6 = sshll.u32 %s2466_s20, 11 }
  0x36   : > { %s212_s12 = scalar_lea.hbm %s3077_s1, %s1643_s6  ;;  %s206_s7 = scalar_lea.vmem [#allocation6], %s1620_s15 }
  0x37   : > { %s2134_s28 = scalar_select %p2630_p12, [#allocation0], [#allocation19] }
  0x38   : > { %s225_s5 = sshll.u32 %s206_s7, 4  ;;  %s2482_s27 = smov 4096   ;;  %s226_s5 = int_to_ptr.vmem [resolvable:$true] %s225_s5 }
  0x39   : > { %s217_s24 = sld [smem:[%s2134_s28]]   ;;  %s2483_s25 = smov 2048  }
  0x3a   : > { %2135 = sst [smem:[#allocation13]] (%p2630_p12), %s2482_s27  ;;  %s2484_s26 = smov 16  }
  0x3b   : > { %2136 = sst [smem:[#allocation13 + $0x1]] (%p2630_p12), %s2483_s25  ;;  %s2485_s29 = smov 128  }
  0x3c   : > { %2137 = sst [smem:[#allocation13 + $0x2]] (%p2630_p12), %s2484_s26  ;;  %s2486_s11 = smov 8  }
  0x3d   : > { %2138 = sst [smem:[#allocation13 + $0x3]] (%p2630_p12), %s2485_s29  ;;  %s203_s28 = scalar_lea.sflag [#allocation7], %s202_s17 }
  0x3e   : > { %2139 = sst [smem:[#allocation13 + $0x4]] (%p2630_p12), %s2485_s29  ;;  %s2487_s7 = smov [#allocation12]  }
  0x3f   : > { %s1623_s21 = sshll.u32 %s217_s24, 26  ;;  %2140 = sst [smem:[#allocation13 + $0x5]] (%p2630_p12), %s2486_s11 }
  0x40   : > { %s1624_s30 = sadd.s32 134217728, %s1623_s21 }
  0x41   : > { %2141 = dma.general (%p2630_p12), %s212_s12, 4096, %s226_s5, %s203_s28, %s2487_s7, [#allocation13], %s1624_s30, 0  }
  0x42   : > { %s258_s26 = scalar_lea.hbm %s3078_s2, %s1643_s6  ;;  %s252_s29 = scalar_lea.vmem [#allocation8], %s1620_s15 }
  0x43   : > { %s2142_s24 = scalar_select %p2630_p12, [#allocation0], [#allocation20] }
  0x44   : > { %s271_s11 = sshll.u32 %s252_s29, 4  ;;  %s2488_s17 = smov 4096   ;;  %s272_s11 = int_to_ptr.vmem [resolvable:$true] %s271_s11 }
  0x45   : > { %s263_s21 = sld [smem:[%s2142_s24]]   ;;  %s2489_s12 = smov 2048  }
  0x46   : > { %2143 = sst [smem:[#allocation15]] (%p2630_p12), %s2488_s17  ;;  %s2490_s5 = smov 16  }
  0x47   : > { %2144 = sst [smem:[#allocation15 + $0x1]] (%p2630_p12), %s2489_s12  ;;  %s2491_s30 = smov 128  }
  0x48   : > { %2145 = sst [smem:[#allocation15 + $0x2]] (%p2630_p12), %s2490_s5  ;;  %s2492_s15 = smov 8  }
  0x49   : > { %2146 = sst [smem:[#allocation15 + $0x3]] (%p2630_p12), %s2491_s30  ;;  %s2493_s27 = smov [#allocation14]  }
  0x4a   : > { %2147 = sst [smem:[#allocation15 + $0x4]] (%p2630_p12), %s2491_s30 }
  0x4b   : > { %s1628_s6 = sshll.u32 %s263_s21, 26  ;;  %2148 = sst [smem:[#allocation15 + $0x5]] (%p2630_p12), %s2492_s15 }
  0x4c   : > { %s1629_s7 = sadd.s32 134217728, %s1628_s6 }
  0x4d   : > { %2149 = dma.general (%p2630_p12), %s258_s26, 4096, %s272_s11, %s203_s28, %s2493_s27, [#allocation15], %s1629_s7, 0  }
  0x4e PF: > { %p1630_p1 = scmp.ge.s32.totalorder %s2474_s22, 1  ;;  %p292_p3 = scmp.lt.s32.totalorder %s2474_s22, 5 }
  0x50   : > { %p293_p6 = pnand %p1630_p1, %p292_p3 }
  0x51   : > { %s2721_s25 = sand.u32 (!%p293_p6), 1, %s2450_s16  }
  0x52   : > { %296 = sbr.rel (%p293_p6) target bundleno = 716 (0x2cc), region = 32  ;;  %s1631_s24 = sshll.u32 (!%p293_p6), %s2721_s25, 8 }
  0x53   : > { %s299_s29 = scalar_lea.sflag (!%p293_p6), [#allocation4], %s2721_s25  ;;  %s2725_s21 = scalar_lea.vmem (!%p293_p6), [#allocation3], %s1631_s24 }
  0x59   : > { %2421 = dma.done.wait (%p2612_p7), %s299_s29, 4096  }
  0x5a   : > { %2423 = vsyncadd (%p2612_p7), %s299_s29, 4294963200  ;;  %s307_s8 = sand.u32 1, %s2578_s23   ;;  %s309_s28 = sand.u32 1, %s2438_s13  }
  0x5b   : > { %s1632_s26 = sshll.u32 %s309_s28, 8  ;;  %s308_s11 = scalar_lea.sflag [#allocation7], %s307_s8 }
  0x5c   : > { %s2733_s17 = scalar_lea.vmem [#allocation6], %s1632_s26 }
  0x5d   : > { %2425 = dma.done.wait (%p2636_p13), %s308_s11, 8192  }
  0x5e   : > { %2427 = vsyncadd (%p2636_p13), %s308_s11, 4294959104  ;;  %s2739_s12 = scalar_lea.vmem [#allocation8], %s1632_s26  ;;  %s2741_s5 = scalar_lea.vmem [#allocation9], %s1631_s24 }
  0x5f   : > { %p1635_p7 = scmp.ne.s32.totalorder %s2458_s18, 0 }
  0x60   : > { %v2494_v0 = vmov (!%p1635_p7), 0.0  }
  0x61   : > { %360 = sbr.rel (%p1635_p7) target bundleno = 113 (0x71), region = 48  ;;  %361 = vst [vmem:[#allocation2] sm:$0xff] (!%p1635_p7), %v2494_v0  ;;  %362 = vst [vmem:[#allocation2 + $0x8] sm:$0xff] (!%p1635_p7), %v2494_v0 }
  0x62   : > { %363 = vst [vmem:[#allocation2 + $0x10] sm:$0xff] (!%p1635_p7), %v2494_v0  ;;  %364 = vst [vmem:[#allocation2 + $0x18] sm:$0xff] (!%p1635_p7), %v2494_v0 }
  0x63   : > { %365 = vst [vmem:[#allocation2 + $0x20] sm:$0xff] (!%p1635_p7), %v2494_v0  ;;  %366 = vst [vmem:[#allocation2 + $0x28] sm:$0xff] (!%p1635_p7), %v2494_v0 }
  0x64   : > { %367 = vst [vmem:[#allocation2 + $0x30] sm:$0xff] (!%p1635_p7), %v2494_v0  ;;  %368 = vst [vmem:[#allocation2 + $0x38] sm:$0xff] (!%p1635_p7), %v2494_v0 }
  0x65   : > { %369 = vst [vmem:[#allocation2 + $0x40] sm:$0xff] (!%p1635_p7), %v2494_v0  ;;  %370 = vst [vmem:[#allocation2 + $0x48] sm:$0xff] (!%p1635_p7), %v2494_v0 }
  0x66   : > { %371 = vst [vmem:[#allocation2 + $0x50] sm:$0xff] (!%p1635_p7), %v2494_v0  ;;  %372 = vst [vmem:[#allocation2 + $0x58] sm:$0xff] (!%p1635_p7), %v2494_v0 }
  0x67   : > { %373 = vst [vmem:[#allocation2 + $0x60] sm:$0xff] (!%p1635_p7), %v2494_v0  ;;  %374 = vst [vmem:[#allocation2 + $0x68] sm:$0xff] (!%p1635_p7), %v2494_v0 }
  0x68   : > { %375 = vst [vmem:[#allocation2 + $0x70] sm:$0xff] %v2494_v0  ;;  %376 = vst [vmem:[#allocation2 + $0x78] sm:$0xff] %v2494_v0 }
  0x69   : > { %377 = vst [vmem:[#allocation2 + $0x80] sm:$0xff] %v2494_v0  ;;  %378 = vst [vmem:[#allocation2 + $0x88] sm:$0xff] %v2494_v0 }
  0x6a   : > { %379 = vst [vmem:[#allocation2 + $0x90] sm:$0xff] %v2494_v0  ;;  %380 = vst [vmem:[#allocation2 + $0x98] sm:$0xff] %v2494_v0 }
  0x6b   : > { %381 = vst [vmem:[#allocation2 + $0xa0] sm:$0xff] %v2494_v0  ;;  %382 = vst [vmem:[#allocation2 + $0xa8] sm:$0xff] %v2494_v0 }
  0x6c   : > { %383 = vst [vmem:[#allocation2 + $0xb0] sm:$0xff] %v2494_v0  ;;  %384 = vst [vmem:[#allocation2 + $0xb8] sm:$0xff] %v2494_v0 }
  0x6d   : > { %385 = vst [vmem:[#allocation2 + $0xc0] sm:$0xff] %v2494_v0  ;;  %386 = vst [vmem:[#allocation2 + $0xc8] sm:$0xff] %v2494_v0 }
  0x6e   : > { %387 = vst [vmem:[#allocation2 + $0xd0] sm:$0xff] %v2494_v0  ;;  %388 = vst [vmem:[#allocation2 + $0xd8] sm:$0xff] %v2494_v0 }
  0x6f   : > { %389 = vst [vmem:[#allocation2 + $0xe0] sm:$0xff] %v2494_v0  ;;  %390 = vst [vmem:[#allocation2 + $0xe8] sm:$0xff] %v2494_v0 }
  0x70   : > { %391 = vst [vmem:[#allocation2 + $0xf0] sm:$0xff] %v2494_v0  ;;  %392 = vst [vmem:[#allocation2 + $0xf8] sm:$0xff] %v2494_v0 }
  0x71 PF: > { %v425_v1 = vld [vmem:[%s2733_s17] sm:$0xff]  ;;  %v426_v2 = vld [vmem:[%s2733_s17 + $0x8] sm:$0xff]  ;;  %v427_v6 = vld [vmem:[%s2733_s17 + $0x10] sm:$0xff]  ;;  %p1636_p9 = scmp.ne.s32.totalorder %s2458_s18, 1 }
  0x72   : > { %v441_v3 = vld [vmem:[%s2733_s17 + $0x80] sm:$0xff]  ;;  %v1998_v4 = vpack.c.bf16 %v426_v2, %v425_v1  ;;  %v442_v5 = vld [vmem:[%s2733_s17 + $0x88] sm:$0xff]  ;;  %v428_v7 = vld [vmem:[%s2733_s17 + $0x18] sm:$0xff] }
  0x73   : > { %v2030_v8 = vpack.c.bf16 %v442_v5, %v441_v3  ;;  %v2002_v9 = vpack.c.bf16 %v428_v7, %v427_v6  ;;  %v443_v10 = vld [vmem:[%s2733_s17 + $0x90] sm:$0xff]  ;;  %v444_v11 = vld [vmem:[%s2733_s17 + $0x98] sm:$0xff]  ;;  %v429_v13 = vld [vmem:[%s2733_s17 + $0x20] sm:$0xff] }
  0x74   : > { %1999 = vmatprep.subr.bf16.mxu0 %v1998_v4  ;;  %v2034_v12 = vpack.c.bf16 %v444_v11, %v443_v10  ;;  %v430_v14 = vld [vmem:[%s2733_s17 + $0x28] sm:$0xff]  ;;  %v445_v15 = vld [vmem:[%s2733_s17 + $0xa0] sm:$0xff]  ;;  %v431_v21 = vld [vmem:[%s2733_s17 + $0x30] sm:$0xff] }
  0x75   : > { %2031 = vmatprep.subr.bf16.mxu1 %v2030_v8  ;;  %2001 = vmatpush3.bf16.xpose.msra.mxu0 %v1998_v4  ;;  %v446_v16 = vld [vmem:[%s2733_s17 + $0xa8] sm:$0xff]  ;;  %v2006_v17 = vpack.c.bf16 %v430_v14, %v429_v13  ;;  %v393_v19 = vld [vmem:[%s2725_s21] sm:$0xff]  ;;  %v432_v22 = vld [vmem:[%s2733_s17 + $0x38] sm:$0xff] }
  0x76   : > { %2033 = vmatpush3.bf16.xpose.msra.mxu1 %v2030_v8  ;;  %2003 = vmatprep.subr.bf16.mxu0 %v2002_v9  ;;  %v2038_v18 = vpack.c.bf16 %v446_v16, %v445_v15  ;;  %v409_v20 = vld [vmem:[%s2725_s21 + $0x80] sm:$0xff]  ;;  %v447_v23 = vld [vmem:[%s2733_s17 + $0xb0] sm:$0xff]  ;;  %v448_v24 = vld [vmem:[%s2733_s17 + $0xb8] sm:$0xff]  ;;  %v2010_v25 = vpack.c.bf16 %v432_v22, %v431_v21 }
  0x77   : > { %2035 = vmatprep.subr.bf16.mxu1 %v2034_v12  ;;  %1806 = vmatprep.mubr.f32.mxu0 %v393_v19  ;;  %v2042_v26 = vpack.c.bf16 %v448_v24, %v447_v23  ;;  %v433_v27 = vld [vmem:[%s2733_s17 + $0x40] sm:$0xff]  ;;  %v434_v28 = vld [vmem:[%s2733_s17 + $0x48] sm:$0xff]  ;;  %v435_v33 = vld [vmem:[%s2733_s17 + $0x50] sm:$0xff] }
  0x78   : > { %1862 = vmatprep.mubr.f32.mxu1 %v409_v20  ;;  %v449_v29 = vld [vmem:[%s2733_s17 + $0xc0] sm:$0xff]  ;;  %v450_v30 = vld [vmem:[%s2733_s17 + $0xc8] sm:$0xff]  ;;  %v2014_v31 = vpack.c.bf16 %v434_v28, %v433_v27  ;;  %v436_v34 = vld [vmem:[%s2733_s17 + $0x58] sm:$0xff] }
  0x79   : > { %v2046_v32 = vpack.c.bf16 %v450_v30, %v449_v29  ;;  %v451_v35 = vld [vmem:[%s2733_s17 + $0xd0] sm:$0xff]  ;;  %v452_v36 = vld [vmem:[%s2733_s17 + $0xd8] sm:$0xff]  ;;  %v2018_v37 = vpack.c.bf16 %v436_v34, %v435_v33  ;;  %v437_v39 = vld [vmem:[%s2733_s17 + $0x60] sm:$0xff] }
  0x7a   : > { %v2050_v38 = vpack.c.bf16 %v452_v36, %v451_v35  ;;  %v438_v40 = vld [vmem:[%s2733_s17 + $0x68] sm:$0xff]  ;;  %v453_v41 = vld [vmem:[%s2733_s17 + $0xe0] sm:$0xff]  ;;  %v439_v45 = vld [vmem:[%s2733_s17 + $0x70] sm:$0xff] }
  0x7b   : > { %v454_v42 = vld [vmem:[%s2733_s17 + $0xe8] sm:$0xff]  ;;  %v2022_v43 = vpack.c.bf16 %v438_v40, %v437_v39  ;;  %v440_v46 = vld [vmem:[%s2733_s17 + $0x78] sm:$0xff]  ;;  %v455_v47 = vld [vmem:[%s2733_s17 + $0xf0] sm:$0xff] }
  0x7c   : > { %v2054_v44 = vpack.c.bf16 %v454_v42, %v453_v41  ;;  %v456_v48 = vld [vmem:[%s2733_s17 + $0xf8] sm:$0xff]  ;;  %v2026_v49 = vpack.c.bf16 %v440_v46, %v439_v45  ;;  %v394_v51 = vld [vmem:[%s2725_s21 + $0x8] sm:$0xff]  ;;  %v395_v53 = vld [vmem:[%s2725_s21 + $0x10] sm:$0xff] }
  0x7d   : > { %2005 = vmatpush3.bf16.xpose.msra.mxu0 %v2002_v9  ;;  %v2058_v50 = vpack.c.bf16 %v456_v48, %v455_v47  ;;  %v410_v52 = vld [vmem:[%s2725_s21 + $0x88] sm:$0xff]  ;;  %v411_v54 = vld [vmem:[%s2725_s21 + $0x90] sm:$0xff]  ;;  %v396_v55 = vld [vmem:[%s2725_s21 + $0x18] sm:$0xff] }
  0x7e   : > { %2037 = vmatpush3.bf16.xpose.msra.mxu1 %v2034_v12  ;;  %2007 = vmatprep.subr.bf16.mxu0 %v2006_v17  ;;  %v412_v56 = vld [vmem:[%s2725_s21 + $0x98] sm:$0xff]  ;;  %v397_v57 = vld [vmem:[%s2725_s21 + $0x20] sm:$0xff]  ;;  %v398_v59 = vld [vmem:[%s2725_s21 + $0x28] sm:$0xff] }
  0x7f   : > { %2039 = vmatprep.subr.bf16.mxu1 %v2038_v18  ;;  %v413_v58 = vld [vmem:[%s2725_s21 + $0xa0] sm:$0xff]  ;;  %v414_v60 = vld [vmem:[%s2725_s21 + $0xa8] sm:$0xff]  ;;  %v399_v61 = vld [vmem:[%s2725_s21 + $0x30] sm:$0xff] }
  0x80   : > { %v415_v62 = vld [vmem:[%s2725_s21 + $0xb0] sm:$0xff]  ;;  %v400_v63 = vld [vmem:[%s2725_s21 + $0x38] sm:$0xff]  ;;  %v401_v1 = vld [vmem:[%s2725_s21 + $0x40] sm:$0xff] }
  0x81   : > { %v416_v0 = vld [vmem:[%s2725_s21 + $0xb8] sm:$0xff]  ;;  %v417_v2 = vld [vmem:[%s2725_s21 + $0xc0] sm:$0xff]  ;;  %v402_v3 = vld [vmem:[%s2725_s21 + $0x48] sm:$0xff] }
  0x82   : > { %v418_v4 = vld [vmem:[%s2725_s21 + $0xc8] sm:$0xff]  ;;  %v403_v5 = vld [vmem:[%s2725_s21 + $0x50] sm:$0xff]  ;;  %v404_v7 = vld [vmem:[%s2725_s21 + $0x58] sm:$0xff] }
  0x83   : > { %v419_v6 = vld [vmem:[%s2725_s21 + $0xd0] sm:$0xff]  ;;  %v420_v8 = vld [vmem:[%s2725_s21 + $0xd8] sm:$0xff]  ;;  %v405_v9 = vld [vmem:[%s2725_s21 + $0x60] sm:$0xff] }
  0x84   : > { %v421_v10 = vld [vmem:[%s2725_s21 + $0xe0] sm:$0xff]  ;;  %v406_v11 = vld [vmem:[%s2725_s21 + $0x68] sm:$0xff]  ;;  %v407_v13 = vld [vmem:[%s2725_s21 + $0x70] sm:$0xff] }
  0x85   : > { %2009 = vmatpush3.bf16.xpose.msra.mxu0 %v2006_v17  ;;  %v422_v12 = vld [vmem:[%s2725_s21 + $0xe8] sm:$0xff]  ;;  %v423_v14 = vld [vmem:[%s2725_s21 + $0xf0] sm:$0xff]  ;;  %v408_v15 = vld [vmem:[%s2725_s21 + $0x78] sm:$0xff] }
  0x86   : > { %2041 = vmatpush3.bf16.xpose.msra.mxu1 %v2038_v18  ;;  %2011 = vmatprep.subr.bf16.mxu0 %v2010_v25  ;;  %v424_v16 = vld [vmem:[%s2725_s21 + $0xf8] sm:$0xff]  ;;  %v457_v17 = vld [vmem:[%s2739_s12] sm:$0xff]  ;;  %v458_v18 = vld [vmem:[%s2739_s12 + $0x8] sm:$0xff] }
  0x87   : > { %2043 = vmatprep.subr.bf16.mxu1 %v2042_v26  ;;  %v473_v19 = vld [vmem:[%s2739_s12 + $0x80] sm:$0xff]  ;;  %v2062_v20 = vpack.c.bf16 %v458_v18, %v457_v17  ;;  %v474_v21 = vld [vmem:[%s2739_s12 + $0x88] sm:$0xff]  ;;  %v459_v23 = vld [vmem:[%s2739_s12 + $0x10] sm:$0xff] }
  0x88   : > { %v2094_v22 = vpack.c.bf16 %v474_v21, %v473_v19  ;;  %v460_v24 = vld [vmem:[%s2739_s12 + $0x18] sm:$0xff]  ;;  %v461_v29 = vld [vmem:[%s2739_s12 + $0x20] sm:$0xff]  ;;  %v462_v30 = vld [vmem:[%s2739_s12 + $0x28] sm:$0xff] }
  0x89   : > { %v476_v27 = vld [vmem:[%s2739_s12 + $0x98] sm:$0xff]  ;;  %v478_v33 = vld [vmem:[%s2739_s12 + $0xa8] sm:$0xff]  ;;  %v463_v35 = vld [vmem:[%s2739_s12 + $0x30] sm:$0xff] }
  0x8a   : > { %v464_v36 = vld [vmem:[%s2739_s12 + $0x38] sm:$0xff]  ;;  %v465_v41 = vld [vmem:[%s2739_s12 + $0x40] sm:$0xff]  ;;  %v466_v42 = vld [vmem:[%s2739_s12 + $0x48] sm:$0xff] }
  0x8b   : > { %v480_v39 = vld [vmem:[%s2739_s12 + $0xb8] sm:$0xff]  ;;  %v482_v45 = vld [vmem:[%s2739_s12 + $0xc8] sm:$0xff]  ;;  %v467_v47 = vld [vmem:[%s2739_s12 + $0x50] sm:$0xff] }
  0x8c   : > { %v468_v48 = vld [vmem:[%s2739_s12 + $0x58] sm:$0xff] }
  0x8d   : > { %2013 = vmatpush3.bf16.xpose.msra.mxu0 %v2010_v25  ;;  %v475_v25 = vld [vmem:[%s2739_s12 + $0x90] sm:$0xff] }
  0x8e   : > { %2045 = vmatpush3.bf16.xpose.msra.mxu1 %v2042_v26  ;;  %2015 = vmatprep.subr.bf16.mxu0 %v2014_v31  ;;  %v2066_v26 = vpack.c.bf16 %v460_v24, %v459_v23  ;;  %v2098_v28 = vpack.c.bf16 %v476_v27, %v475_v25 }
  0x8f   : > { %2047 = vmatprep.subr.bf16.mxu1 %v2046_v32 }
  0x95   : > { %2017 = vmatpush3.bf16.xpose.msra.mxu0 %v2014_v31  ;;  %v477_v31 = vld [vmem:[%s2739_s12 + $0xa0] sm:$0xff] }
  0x96   : > { %2049 = vmatpush3.bf16.xpose.msra.mxu1 %v2046_v32  ;;  %2019 = vmatprep.subr.bf16.mxu0 %v2018_v37  ;;  %v2070_v32 = vpack.c.bf16 %v462_v30, %v461_v29  ;;  %v2102_v34 = vpack.c.bf16 %v478_v33, %v477_v31 }
  0x97   : > { %2051 = vmatprep.subr.bf16.mxu1 %v2050_v38 }
  0x9d   : > { %2021 = vmatpush3.bf16.xpose.msra.mxu0 %v2018_v37  ;;  %v479_v37 = vld [vmem:[%s2739_s12 + $0xb0] sm:$0xff] }
  0x9e   : > { %2053 = vmatpush3.bf16.xpose.msra.mxu1 %v2050_v38  ;;  %2023 = vmatprep.subr.bf16.mxu0 %v2022_v43  ;;  %v2074_v38 = vpack.c.bf16 %v464_v36, %v463_v35  ;;  %v2106_v40 = vpack.c.bf16 %v480_v39, %v479_v37 }
  0x9f   : > { %2055 = vmatprep.subr.bf16.mxu1 %v2054_v44 }
  0xa5   : > { %2025 = vmatpush3.bf16.xpose.msra.mxu0 %v2022_v43  ;;  %v481_v43 = vld [vmem:[%s2739_s12 + $0xc0] sm:$0xff] }
  0xa6   : > { %2057 = vmatpush3.bf16.xpose.msra.mxu1 %v2054_v44  ;;  %2027 = vmatprep.subr.bf16.mxu0 %v2026_v49  ;;  %v2078_v44 = vpack.c.bf16 %v466_v42, %v465_v41  ;;  %v2110_v46 = vpack.c.bf16 %v482_v45, %v481_v43 }
  0xa7   : > { %2059 = vmatprep.subr.bf16.mxu1 %v2058_v50 }
  0xad   : > { %2029 = vmatpush3.bf16.xpose.msra.mxu0 %v2026_v49  ;;  %v483_v49 = vld [vmem:[%s2739_s12 + $0xd0] sm:$0xff] }
  0xae   : > { %2061 = vmatpush3.bf16.xpose.msra.mxu1 %v2058_v50  ;;  %2063 = vmatprep.subr.bf16.mxu0 %v2062_v20  ;;  %v2082_v50 = vpack.c.bf16 %v468_v48, %v467_v47 }
  0xaf   : > { %2095 = vmatprep.subr.bf16.mxu1 %v2094_v22 }
  0xb4   : > { %1807 = vmatmul.mubr.f32.vlgmr.msra.gmra.mrb[0].mxu0 %v394_v51  ;;  %v484_v51 = vld [vmem:[%s2739_s12 + $0xd8] sm:$0xff] }
  0xb5   : > { %1863 = vmatmul.mubr.f32.vlgmr.msra.gmra.mrb[0].mxu1 %v410_v52  ;;  %1809 = vmatprep.mubr.f32.mxu0 %v395_v53  ;;  %v2114_v52 = vpack.c.bf16 %v484_v51, %v483_v49  ;;  %v469_v53 = vld [vmem:[%s2739_s12 + $0x60] sm:$0xff] }
  0xb6   : > { %1865 = vmatprep.mubr.f32.mxu1 %v411_v54  ;;  %2065 = vmatpush3.bf16.msra.mxu0 %v2062_v20  ;;  %v470_v54 = vld [vmem:[%s2739_s12 + $0x68] sm:$0xff] }
  0xb7   : > { %2097 = vmatpush3.bf16.msra.mxu1 %v2094_v22  ;;  %2067 = vmatprep.subr.bf16.mxu0 %v2066_v26 }
  0xb8   : > { %1810 = vmatmul.mubr.f32.gmra.mrb[2].mxu0 %v396_v55  ;;  %2099 = vmatprep.subr.bf16.mxu1 %v2098_v28  ;;  %v485_v55 = vld [vmem:[%s2739_s12 + $0xe0] sm:$0xff] }
  0xb9   : > { %1866 = vmatmul.mubr.f32.gmra.mrb[2].mxu1 %v412_v56  ;;  %1812 = vmatprep.mubr.f32.mxu0 %v397_v57  ;;  %v2086_v56 = vpack.c.bf16 %v470_v54, %v469_v53  ;;  %v486_v57 = vld [vmem:[%s2739_s12 + $0xe8] sm:$0xff] }
  0xba   : > { %1868 = vmatprep.mubr.f32.mxu1 %v413_v58  ;;  %2069 = vmatpush3.bf16.msra.mxu0 %v2066_v26  ;;  %v2118_v58 = vpack.c.bf16 %v486_v57, %v485_v55 }
  0xbb   : > { %2101 = vmatpush3.bf16.msra.mxu1 %v2098_v28  ;;  %2071 = vmatprep.subr.bf16.mxu0 %v2070_v32 }
  0xbc   : > { %1813 = vmatmul.mubr.f32.gmra.mrb[4].mxu0 %v398_v59  ;;  %2103 = vmatprep.subr.bf16.mxu1 %v2102_v34  ;;  %v471_v59 = vld [vmem:[%s2739_s12 + $0x70] sm:$0xff] }
  0xbd   : > { %1869 = vmatmul.mubr.f32.gmra.mrb[4].mxu1 %v414_v60  ;;  %1815 = vmatprep.mubr.f32.mxu0 %v399_v61  ;;  %v472_v60 = vld [vmem:[%s2739_s12 + $0x78] sm:$0xff]  ;;  %v487_v61 = vld [vmem:[%s2739_s12 + $0xf0] sm:$0xff] }
  0xbe   : > { %1871 = vmatprep.mubr.f32.mxu1 %v415_v62  ;;  %2073 = vmatpush3.bf16.msra.mxu0 %v2070_v32  ;;  %v2090_v62 = vpack.c.bf16 %v472_v60, %v471_v59 }
  0xbf   : > { %2105 = vmatpush3.bf16.msra.mxu1 %v2102_v34  ;;  %2075 = vmatprep.subr.bf16.mxu0 %v2074_v38 }
  0xc0   : > { %1816 = vmatmul.mubr.f32.gmra.mrb[6].mxu0 %v400_v63  ;;  %2107 = vmatprep.subr.bf16.mxu1 %v2106_v40  ;;  %v488_v63 = vld [vmem:[%s2739_s12 + $0xf8] sm:$0xff] }
  0xc1   : > { %1872 = vmatmul.mubr.f32.gmra.mrb[6].mxu1 %v416_v0  ;;  %1818 = vmatprep.mubr.f32.mxu0 %v401_v1  ;;  %v2122_v0 = vpack.c.bf16 %v488_v63, %v487_v61 }
  0xc2   : > { %1874 = vmatprep.mubr.f32.mxu1 %v417_v2  ;;  %2077 = vmatpush3.bf16.msra.mxu0 %v2074_v38 }
  0xc3   : > { %2109 = vmatpush3.bf16.msra.mxu1 %v2106_v40  ;;  %2079 = vmatprep.subr.bf16.mxu0 %v2078_v44 }
  0xc4   : > { %1819 = vmatmul.mubr.f32.gmra.mrb[8].mxu0 %v402_v3  ;;  %2111 = vmatprep.subr.bf16.mxu1 %v2110_v46 }
  0xc5   : > { %1875 = vmatmul.mubr.f32.gmra.mrb[8].mxu1 %v418_v4  ;;  %1821 = vmatprep.mubr.f32.mxu0 %v403_v5 }
  0xc6   : > { %1877 = vmatprep.mubr.f32.mxu1 %v419_v6  ;;  %2081 = vmatpush3.bf16.msra.mxu0 %v2078_v44 }
  0xc7   : > { %2113 = vmatpush3.bf16.msra.mxu1 %v2110_v46  ;;  %2083 = vmatprep.subr.bf16.mxu0 %v2082_v50 }
  0xc8   : > { %1822 = vmatmul.mubr.f32.gmra.mrb[10].mxu0 %v404_v7  ;;  %2115 = vmatprep.subr.bf16.mxu1 %v2114_v52 }
  0xc9   : > { %1878 = vmatmul.mubr.f32.gmra.mrb[10].mxu1 %v420_v8  ;;  %1824 = vmatprep.mubr.f32.mxu0 %v405_v9 }
  0xca   : > { %1880 = vmatprep.mubr.f32.mxu1 %v421_v10  ;;  %2085 = vmatpush3.bf16.msra.mxu0 %v2082_v50 }
  0xcb   : > { %2117 = vmatpush3.bf16.msra.mxu1 %v2114_v52  ;;  %2087 = vmatprep.subr.bf16.mxu0 %v2086_v56 }
  0xcc   : > { %1825 = vmatmul.mubr.f32.gmra.mrb[12].mxu0 %v406_v11  ;;  %2119 = vmatprep.subr.bf16.mxu1 %v2118_v58 }
  0xcd   : > { %1881 = vmatmul.mubr.f32.gmra.mrb[12].mxu1 %v422_v12  ;;  %1827 = vmatprep.mubr.f32.mxu0 %v407_v13 }
  0xce   : > { %1883 = vmatprep.mubr.f32.mxu1 %v423_v14  ;;  %2089 = vmatpush3.bf16.msra.mxu0 %v2086_v56 }
  0xcf   : > { %2121 = vmatpush3.bf16.msra.mxu1 %v2118_v58  ;;  %2091 = vmatprep.subr.bf16.mxu0 %v2090_v62 }
  0xd0   : > { %1828 = vmatmul.mubr.f32.gmra.mrb[14].mxu0 %v408_v15  ;;  %2123 = vmatprep.subr.bf16.mxu1 %v2122_v0 }
  0xd1   : > { %1884 = vmatmul.mubr.f32.gmra.mrb[14].mxu1 %v424_v16 }
  0xd2   : > { %2093 = vmatpush3.bf16.msra.mxu0 %v2090_v62 }
  0xd3   : > { %2125 = vmatpush3.bf16.msra.mxu1 %v2122_v0 }
 0x187   : > { %v1808_v1 = vpop.f32.mrb[0].mxu0 }
 0x188   : > { %v780_v2 = vmul.f32 0.088388346, %v1808_v1  ;;  %v1864_v3 = vpop.f32.mrb[0].mxu1  ;;  %v555_v4 = vpop.f32.mrb[1].mxu0 }
 0x189   : > { %v796_v5 = vmul.f32 0.088388346, %v1864_v3  ;;  %v779_v6 = vmul.f32 0.088388346, %v555_v4  ;;  %v700_v7 = vpop.f32.mrb[1].mxu1 }
 0x18a   : > { %v795_v8 = vmul.f32 0.088388346, %v700_v7 }
 0x18b   : > { %v812_v9 = vmax.f32 %v780_v2, %v796_v5  ;;  %v1811_v10 = vpop.f32.mrb[2].mxu0 }
 0x18c   : > { %v811_v11 = vmax.f32 %v779_v6, %v795_v8  ;;  %v782_v12 = vmul.f32 0.088388346, %v1811_v10  ;;  %v1867_v13 = vpop.f32.mrb[2].mxu1  ;;  %v565_v14 = vpop.f32.mrb[3].mxu0 }
 0x18d   : > { %v828_v15 = vsub.f32 %v780_v2, %v812_v9  ;;  %v844_v16 = vsub.f32 %v796_v5, %v812_v9  ;;  %v798_v17 = vmul.f32 0.088388346, %v1867_v13  ;;  %v781_v18 = vmul.f32 0.088388346, %v565_v14  ;;  %v710_v19 = vpop.f32.mrb[3].mxu1 }
 0x18e   : > { %v827_v20 = vsub.f32 %v779_v6, %v811_v11  ;;  %v843_v21 = vsub.f32 %v795_v8, %v811_v11  ;;  %v797_v22 = vmul.f32 0.088388346, %v710_v19 }
 0x18f   : > { %v861_v23 = vmul.f32 1.442695, %v828_v15  ;;  %v893_v24 = vmul.f32 1.442695, %v844_v16  ;;  %v814_v25 = vmax.f32 %v782_v12, %v798_v17  ;;  %v1814_v26 = vpop.f32.mrb[4].mxu0 }
 0x190   : > { %v859_v27 = vmul.f32 1.442695, %v827_v20  ;;  %v891_v28 = vmul.f32 1.442695, %v843_v21  ;;  %v813_v29 = vmax.f32 %v781_v18, %v797_v22  ;;  %v784_v30 = vmul.f32 0.088388346, %v1814_v26 }
 0x191   : > { %2280 = vpow2.f32 %v861_v23  ;;  %v830_v31 = vsub.f32 %v782_v12, %v814_v25  ;;  %v846_v32 = vsub.f32 %v798_v17, %v814_v25  ;;  %v1870_v33 = vpop.f32.mrb[4].mxu1  ;;  %v575_v34 = vpop.f32.mrb[5].mxu0 }
 0x192   : > { %2282 = vpow2.f32 %v893_v24  ;;  %v829_v35 = vsub.f32 %v781_v18, %v813_v29  ;;  %v845_v36 = vsub.f32 %v797_v22, %v813_v29  ;;  %v800_v37 = vmul.f32 0.088388346, %v1870_v33  ;;  %v720_v38 = vpop.f32.mrb[5].mxu1 }
 0x193   : > { %2284 = vpow2.f32 %v859_v27  ;;  %v865_v39 = vmul.f32 1.442695, %v830_v31  ;;  %v897_v40 = vmul.f32 1.442695, %v846_v32  ;;  %v783_v41 = vmul.f32 0.088388346, %v575_v34 }
 0x194   : > { %2286 = vpow2.f32 %v891_v28  ;;  %v863_v42 = vmul.f32 1.442695, %v829_v35  ;;  %v895_v43 = vmul.f32 1.442695, %v845_v36  ;;  %v816_v44 = vmax.f32 %v784_v30, %v800_v37  ;;  %v1817_v45 = vpop.f32.mrb[6].mxu0  ;;  %v1873_v46 = vpop.f32.mrb[6].mxu1 }
 0x195   : > { %2288 = vpow2.f32 %v865_v39  ;;  %v799_v47 = vmul.f32 0.088388346, %v720_v38  ;;  %v786_v48 = vmul.f32 0.088388346, %v1817_v45  ;;  %v802_v49 = vmul.f32 0.088388346, %v1873_v46 }
 0x196   : > { %2290 = vpow2.f32 %v897_v40  ;;  %v832_v50 = vsub.f32 %v784_v30, %v816_v44  ;;  %v848_v51 = vsub.f32 %v800_v37, %v816_v44  ;;  %v585_v52 = vpop.f32.mrb[7].mxu0  ;;  %v730_v53 = vpop.f32.mrb[7].mxu1 }
 0x197   : > { %2292 = vpow2.f32 %v863_v42  ;;  %v815_v54 = vmax.f32 %v783_v41, %v799_v47  ;;  %v818_v55 = vmax.f32 %v786_v48, %v802_v49  ;;  %v785_v56 = vmul.f32 0.088388346, %v585_v52  ;;  %v1820_v57 = vpop.f32.mrb[8].mxu0 }
 0x198   : > { %2294 = vpow2.f32 %v895_v43  ;;  %v869_v58 = vmul.f32 1.442695, %v832_v50  ;;  %v901_v59 = vmul.f32 1.442695, %v848_v51  ;;  %v801_v60 = vmul.f32 0.088388346, %v730_v53 }
 0x199   : > { %v831_v61 = vsub.f32 %v783_v41, %v815_v54  ;;  %v847_v62 = vsub.f32 %v799_v47, %v815_v54  ;;  %v834_v63 = vsub.f32 %v786_v48, %v818_v55  ;;  %v850_v0 = vsub.f32 %v802_v49, %v818_v55  ;;  %v1876_v1 = vpop.f32.mrb[8].mxu1  ;;  %v595_v2 = vpop.f32.mrb[9].mxu0 }
 0x19a   : > { %2296 = vpow2.f32 %v869_v58  ;;  %v817_v3 = vmax.f32 %v785_v56, %v801_v60  ;;  %v788_v4 = vmul.f32 0.088388346, %v1820_v57  ;;  %v804_v5 = vmul.f32 0.088388346, %v1876_v1  ;;  %v740_v6 = vpop.f32.mrb[9].mxu1 }
 0x19b   : > { %v2840_v7 = vpop.eup %2280  ;;  %2298 = vpow2.f32 %v901_v59  ;;  %v867_v8 = vmul.f32 1.442695, %v831_v61  ;;  %v899_v9 = vmul.f32 1.442695, %v847_v62  ;;  %v873_v10 = vmul.f32 1.442695, %v834_v63 }
 0x19c   : > { %v2842_v11 = vpop.eup %2282  ;;  %v905_v12 = vmul.f32 1.442695, %v850_v0  ;;  %v833_v13 = vsub.f32 %v785_v56, %v817_v3  ;;  %v849_v14 = vsub.f32 %v801_v60, %v817_v3  ;;  %v820_v15 = vmax.f32 %v788_v4, %v804_v5  ;;  %v1823_v16 = vpop.f32.mrb[10].mxu0 }
 0x19d   : > { %v1879_v17 = vpop.f32.mrb[10].mxu1  ;;  %v2844_v18 = vpop.eup %2284  ;;  %v924_v19 = vadd.f32 %v2842_v11, %v2840_v7  ;;  %2300 = vpow2.f32 %v867_v8  ;;  %v787_v20 = vmul.f32 0.088388346, %v595_v2  ;;  %v803_v21 = vmul.f32 0.088388346, %v740_v6 }
 0x19e   : > { %v605_v22 = vpop.f32.mrb[11].mxu0  ;;  %v750_v23 = vpop.f32.mrb[11].mxu1  ;;  %2302 = vpow2.f32 %v899_v9  ;;  %v871_v25 = vmul.f32 1.442695, %v833_v13  ;;  %v903_v26 = vmul.f32 1.442695, %v849_v14  ;;  %v836_v27 = vsub.f32 %v788_v4, %v820_v15 }
 0x19f   : > { %v2848_v24 = vpop.eup %2286  ;;  %2304 = vrcp.f32 %v924_v19  ;;  %v852_v30 = vsub.f32 %v804_v5, %v820_v15  ;;  %v819_v31 = vmax.f32 %v787_v20, %v803_v21  ;;  %v1826_v32 = vpop.f32.mrb[12].mxu0  ;;  %v790_v35 = vmul.f32 0.088388346, %v1823_v16 }
 0x1a0   : > { %v2850_v28 = vpop.eup %2288  ;;  %v2854_v29 = vadd.f32 %v2848_v24, %v2844_v18  ;;  %2306 = vpow2.f32 %v873_v10  ;;  %v877_v34 = vmul.f32 1.442695, %v836_v27  ;;  %v806_v36 = vmul.f32 0.088388346, %v1879_v17  ;;  %v1882_v41 = vpop.f32.mrb[12].mxu1 }
 0x1a1   : > { %v2856_v33 = vpop.eup %2290  ;;  %2308 = vpow2.f32 %v905_v12  ;;  %v909_v39 = vmul.f32 1.442695, %v852_v30  ;;  %v835_v40 = vsub.f32 %v787_v20, %v819_v31  ;;  %v615_v42 = vpop.f32.mrb[13].mxu0  ;;  %v851_v44 = vsub.f32 %v803_v21, %v819_v31 }
 0x1a2   : > { %v2858_v37 = vpop.eup %2292  ;;  %v2862_v38 = vadd.f32 %v2856_v33, %v2850_v28  ;;  %2310 = vpow2.f32 %v871_v25  ;;  %v822_v45 = vmax.f32 %v790_v35, %v806_v36  ;;  %v789_v46 = vmul.f32 0.088388346, %v605_v22  ;;  %v760_v47 = vpop.f32.mrb[13].mxu1 }
 0x1a3   : > { %v2864_v43 = vpop.eup %2294  ;;  %2312 = vpow2.f32 %v903_v26  ;;  %v875_v49 = vmul.f32 1.442695, %v835_v40  ;;  %v805_v50 = vmul.f32 0.088388346, %v750_v23  ;;  %v1829_v51 = vpop.f32.mrb[14].mxu0 }
 0x1a4   : > { %v2868_v48 = vadd.f32 %v2864_v43, %v2858_v37  ;;  %v2870_v52 = vpop.eup %2296  ;;  %2314 = vpow2.f32 %v877_v34  ;;  %v907_v53 = vmul.f32 1.442695, %v851_v44  ;;  %v838_v54 = vsub.f32 %v790_v35, %v822_v45  ;;  %v1885_v56 = vpop.f32.mrb[14].mxu1 }
 0x1a5   : > { %v854_v55 = vsub.f32 %v806_v36, %v822_v45  ;;  %v625_v57 = vpop.f32.mrb[15].mxu0  ;;  %v2872_v58 = vpop.eup %2298  ;;  %2316 = vpow2.f32 %v909_v39  ;;  %v821_v59 = vmax.f32 %v789_v46, %v805_v50  ;;  %v792_v60 = vmul.f32 0.088388346, %v1826_v32 }
 0x1a6   : > { %v808_v61 = vmul.f32 0.088388346, %v1882_v41  ;;  %v770_v62 = vpop.f32.mrb[15].mxu1  ;;  %v2876_v63 = vadd.f32 %v2872_v58, %v2870_v52  ;;  %2318 = vpow2.f32 %v875_v49  ;;  %v881_v0 = vmul.f32 1.442695, %v838_v54 }
 0x1a7   : > { %v913_v1 = vmul.f32 1.442695, %v854_v55  ;;  %v2878_v2 = vpop.eup %2300  ;;  %2320 = vpow2.f32 %v907_v53  ;;  %v837_v3 = vsub.f32 %v789_v46, %v821_v59  ;;  %v853_v4 = vsub.f32 %v805_v50, %v821_v59 }
 0x1a8   : > { %v824_v5 = vmax.f32 %v792_v60, %v808_v61  ;;  %v2880_v6 = vpop.eup %2302  ;;  %2322 = vpow2.f32 %v881_v0  ;;  %v791_v8 = vmul.f32 0.088388346, %v615_v42  ;;  %v807_v9 = vmul.f32 0.088388346, %v760_v47 }
 0x1a9   : > { %v794_v10 = vmul.f32 0.088388346, %v1829_v51  ;;  %v2305_v12 = vpop.eup %2304  ;;  %v927_v13 = vadd.f32 %v2880_v6, %v2878_v2  ;;  %2324 = vpow2.f32 %v913_v1  ;;  %v879_v14 = vmul.f32 1.442695, %v837_v3 }
 0x1aa   : > { %v911_v15 = vmul.f32 1.442695, %v853_v4  ;;  %v2884_v16 = vpop.eup %2306  ;;  %v840_v17 = vsub.f32 %v792_v60, %v824_v5  ;;  %v856_v19 = vsub.f32 %v808_v61, %v824_v5  ;;  %v823_v20 = vmax.f32 %v791_v8, %v807_v9 }
 0x1ab   : > { %v810_v21 = vmul.f32 0.088388346, %v1885_v56  ;;  %v2886_v22 = vpop.eup %2308  ;;  %2326 = vpow2.f32 %v879_v14  ;;  %v793_v23 = vmul.f32 0.088388346, %v625_v57  ;;  %v809_v25 = vmul.f32 0.088388346, %v770_v62 }
 0x1ac   : > { %v2889_v26 = vmul.f32 %v2305_v12, %v2840_v7  ;;  %v2891_v27 = vpop.eup %2310  ;;  %v930_v30 = vadd.f32 %v2886_v22, %v2884_v16  ;;  %2328 = vpow2.f32 %v911_v15  ;;  %v885_v31 = vmul.f32 1.442695, %v840_v17 }
 0x1ad   : > { %v917_v32 = vmul.f32 1.442695, %v856_v19  ;;  %v2895_v34 = vpop.eup %2312  ;;  %v839_v35 = vsub.f32 %v791_v8, %v823_v20  ;;  %v855_v36 = vsub.f32 %v807_v9, %v823_v20  ;;  %v826_v39 = vmax.f32 %v794_v10, %v810_v21 }
 0x1ae   : > { %v825_v40 = vmax.f32 %v793_v23, %v809_v25  ;;  %v2897_v41 = vpop.eup %2314  ;;  %v929_v7 = vadd.f32 %v2895_v34, %v2891_v27  ;;  %2330 = vpow2.f32 %v885_v31  ;;  %v2902_v42 = vmul.f32 %v2305_v12, %v2842_v11 }
 0x1af   : > { %v2904_v44 = vpop.eup %2316  ;;  %2332 = vpow2.f32 %v917_v32  ;;  %v883_v45 = vmul.f32 1.442695, %v839_v35  ;;  %v915_v46 = vmul.f32 1.442695, %v855_v36  ;;  %v842_v47 = vsub.f32 %v794_v10, %v826_v39 }
 0x1b0   : > { %v2906_v49 = vpop.eup %2318  ;;  %v932_v50 = vadd.f32 %v2904_v44, %v2897_v41  ;;  %v858_v51 = vsub.f32 %v810_v21, %v826_v39  ;;  %v841_v53 = vsub.f32 %v793_v23, %v825_v40  ;;  %v857_v54 = vsub.f32 %v809_v25, %v825_v40 }
 0x1b1   : > { %v2910_v55 = vpop.eup %2320  ;;  %2334 = vpow2.f32 %v883_v45  ;;  %v889_v56 = vmul.f32 1.442695, %v842_v47 }
 0x1b2   : > { %v2912_v11 = vpop.eup %2322  ;;  %v931_v57 = vadd.f32 %v2910_v55, %v2906_v49  ;;  %2336 = vpow2.f32 %v915_v46  ;;  %v921_v59 = vmul.f32 1.442695, %v858_v51  ;;  %v887_v60 = vmul.f32 1.442695, %v841_v53 }
 0x1b3   : > { %v2916_v61 = vpop.eup %2324  ;;  %2338 = vpow2.f32 %v889_v56  ;;  %v919_v62 = vmul.f32 1.442695, %v857_v54 }
 0x1b4   : > { %v934_v0 = vadd.f32 %v2916_v61, %v2912_v11  ;;  %2340 = vpow2.f32 %v921_v59 }
 0x1b5   : > { %v2920_v1 = vpop.eup %2326  ;;  %2342 = vpow2.f32 %v887_v60  ;;  %v988_v60 = vld [vmem:[#allocation2 + $0x8] sm:$0xff] }
 0x1b6   : > { %v2922_v3 = vpop.eup %2328  ;;  %2344 = vpow2.f32 %v919_v62  ;;  %v987_v62 = vld [vmem:[#allocation2] sm:$0xff] }
 0x1b7   : > { %v933_v4 = vadd.f32 %v2922_v3, %v2920_v1  ;;  %2346 = vrcp.f32 %v2854_v29 }
 0x1b8   : > { %v2927_v5 = vpop.eup %2330  ;;  %2348 = vrcp.f32 %v2868_v48 }
 0x1b9   : > { %v2930_v8 = vpop.eup %2332  ;;  %2350 = vrcp.f32 %v2862_v38 }
 0x1ba   : > { %v936_v9 = vadd.f32 %v2930_v8, %v2927_v5  ;;  %2352 = vrcp.f32 %v927_v13 }
 0x1bb   : > { %v2935_v10 = vpop.eup %2334  ;;  %2354 = vrcp.f32 %v2876_v63 }
 0x1bc   : > { %v2938_v12 = vpop.eup %2336  ;;  %2356 = vrcp.f32 %v929_v7 }
 0x1bd   : > { %v2940_v29 = vpop.eup %2338  ;;  %v935_v48 = vadd.f32 %v2938_v12, %v2935_v10  ;;  %2358 = vrcp.f32 %v930_v30 }
 0x1be   : > { %v2944_v14 = vpop.eup %2340  ;;  %2360 = vrcp.f32 %v931_v57 }
 0x1bf   : > { %v2946_v38 = vpop.eup %2342  ;;  %v938_v13 = vadd.f32 %v2944_v14, %v2940_v29  ;;  %2362 = vrcp.f32 %v932_v50 }
 0x1c0   : > { %v2950_v15 = vpop.eup %2344  ;;  %2364 = vrcp.f32 %v933_v4 }
 0x1c1   : > { %v2347_v63 = vpop.eup %2346  ;;  %v937_v17 = vadd.f32 %v2950_v15, %v2946_v38  ;;  %2366 = vrcp.f32 %v934_v0  ;;  %v1003_v0 = vld [vmem:[#allocation2 + $0x80] sm:$0xff] }
 0x1c2   : > { %v2349_v19 = vpop.eup %2348  ;;  %v955_v20 = vmul.f32 %v2347_v63, %v2844_v18  ;;  %v971_v21 = vmul.f32 %v2347_v63, %v2848_v24  ;;  %2368 = vrcp.f32 %v935_v48  ;;  %v1006_v48 = vld [vmem:[#allocation2 + $0x98] sm:$0xff] }
 0x1c3   : > { %v2351_v23 = vpop.eup %2350  ;;  %v957_v25 = vmul.f32 %v2349_v19, %v2858_v37  ;;  %v973_v30 = vmul.f32 %v2349_v19, %v2864_v43  ;;  %2370 = vrcp.f32 %v936_v9 }
 0x1c4   : > { %v2353_v31 = vpop.eup %2352  ;;  %1918 = vmatprep.mubr.f32.mxu0 %v955_v20  ;;  %1974 = vmatprep.mubr.f32.mxu1 %v971_v21  ;;  %v958_v32 = vmul.f32 %v2351_v23, %v2850_v28  ;;  %v974_v35 = vmul.f32 %v2351_v23, %v2856_v33  ;;  %2372 = vrcp.f32 %v937_v17 }
 0x1c5   : > { %v2355_v36 = vpop.eup %2354  ;;  %1919 = vmatmul.mubr.f32.vlgmr.msra.gmra.mrb[16].mxu0 %v2889_v26  ;;  %1975 = vmatmul.mubr.f32.vlgmr.msra.gmra.mrb[16].mxu1 %v2902_v42  ;;  %v959_v18 = vmul.f32 %v2353_v31, %v2878_v2  ;;  %v975_v24 = vmul.f32 %v2353_v31, %v2880_v6  ;;  %2374 = vrcp.f32 %v938_v13  ;;  %v991_v31 = vld [vmem:[#allocation2 + $0x20] sm:$0xff] }
 0x1c6   : > { %v2357_v37 = vpop.eup %2356  ;;  %1921 = vmatprep.mubr.f32.mxu0 %v957_v25  ;;  %1977 = vmatprep.mubr.f32.mxu1 %v973_v30  ;;  %v960_v43 = vmul.f32 %v2355_v36, %v2870_v52  ;;  %v976_v28 = vmul.f32 %v2355_v36, %v2872_v58  ;;  %v992_v25 = vld [vmem:[#allocation2 + $0x28] sm:$0xff] }
 0x1c7   : > { %v2359_v39 = vpop.eup %2358  ;;  %v961_v33 = vmul.f32 %v2357_v37, %v2891_v27  ;;  %v977_v40 = vmul.f32 %v2357_v37, %v2895_v34  ;;  %v1008_v30 = vld [vmem:[#allocation2 + $0xa8] sm:$0xff] }
 0x1c8   : > { %v2361_v26 = vpop.eup %2360  ;;  %v962_v7 = vmul.f32 %v2359_v39, %v2884_v16  ;;  %v978_v2 = vmul.f32 %v2359_v39, %v2886_v22 }
 0x1c9   : > { %v2363_v42 = vpop.eup %2362  ;;  %1922 = vmatmul.mubr.f32.gmra.mrb[18].mxu0 %v958_v32  ;;  %1978 = vmatmul.mubr.f32.gmra.mrb[18].mxu1 %v974_v35  ;;  %v963_v6 = vmul.f32 %v2361_v26, %v2906_v49  ;;  %v979_v45 = vmul.f32 %v2361_v26, %v2910_v55  ;;  %v1007_v32 = vld [vmem:[#allocation2 + $0xa0] sm:$0xff]  ;;  %v993_v26 = vld [vmem:[#allocation2 + $0x30] sm:$0xff] }
 0x1ca   : > { %v2365_v52 = vpop.eup %2364  ;;  %1924 = vmatprep.mubr.f32.mxu0 %v959_v18  ;;  %1980 = vmatprep.mubr.f32.mxu1 %v975_v24  ;;  %v964_v58 = vmul.f32 %v2363_v42, %v2897_v41  ;;  %v980_v27 = vmul.f32 %v2363_v42, %v2904_v44 }
 0x1cb   : > { %v2367_v34 = vpop.eup %2366  ;;  %v965_v46 = vmul.f32 %v2365_v52, %v2920_v1  ;;  %v981_v16 = vmul.f32 %v2365_v52, %v2922_v3 }
 0x1cc   : > { %v2369_v22 = vpop.eup %2368  ;;  %v966_v47 = vmul.f32 %v2367_v34, %v2912_v11  ;;  %v982_v50 = vmul.f32 %v2367_v34, %v2916_v61  ;;  %v1004_v61 = vld [vmem:[#allocation2 + $0x88] sm:$0xff] }
 0x1cd   : > { %v2371_v49 = vpop.eup %2370  ;;  %1925 = vmatmul.mubr.f32.gmra.mrb[20].mxu0 %v960_v43  ;;  %1981 = vmatmul.mubr.f32.gmra.mrb[20].mxu1 %v976_v28  ;;  %v967_v51 = vmul.f32 %v2369_v22, %v2935_v10  ;;  %v983_v53 = vmul.f32 %v2369_v22, %v2938_v12  ;;  %v995_v22 = vld [vmem:[#allocation2 + $0x40] sm:$0xff] }
 0x1ce   : > { %v2373_v41 = vpop.eup %2372  ;;  %1927 = vmatprep.mubr.f32.mxu0 %v961_v33  ;;  %1983 = vmatprep.mubr.f32.mxu1 %v977_v40  ;;  %v968_v44 = vmul.f32 %v2371_v49, %v2927_v5  ;;  %v984_v54 = vmul.f32 %v2371_v49, %v2930_v8  ;;  %v994_v33 = vld [vmem:[#allocation2 + $0x38] sm:$0xff] }
 0x1cf   : > { %v2375_v55 = vpop.eup %2374  ;;  %v969_v56 = vmul.f32 %v2373_v41, %v2946_v38  ;;  %v985_v11 = vmul.f32 %v2373_v41, %v2950_v15  ;;  %v1005_v38 = vld [vmem:[#allocation2 + $0x90] sm:$0xff]  ;;  %v1010_v40 = vld [vmem:[#allocation2 + $0xb8] sm:$0xff] }
 0x1d0   : > { %v970_v57 = vmul.f32 %v2375_v55, %v2940_v29  ;;  %v986_v59 = vmul.f32 %v2375_v55, %v2944_v14  ;;  %v990_v29 = vld [vmem:[#allocation2 + $0x18] sm:$0xff]  ;;  %v989_v14 = vld [vmem:[#allocation2 + $0x10] sm:$0xff] }
 0x1d1   : > { %1928 = vmatmul.mubr.f32.gmra.mrb[22].mxu0 %v962_v7  ;;  %1984 = vmatmul.mubr.f32.gmra.mrb[22].mxu1 %v978_v2  ;;  %v1009_v7 = vld [vmem:[#allocation2 + $0xb0] sm:$0xff] }
 0x1d2   : > { %1930 = vmatprep.mubr.f32.mxu0 %v963_v6  ;;  %1986 = vmatprep.mubr.f32.mxu1 %v979_v45 }
 0x1d5   : > { %1931 = vmatmul.mubr.f32.gmra.mrb[24].mxu0 %v964_v58  ;;  %1987 = vmatmul.mubr.f32.gmra.mrb[24].mxu1 %v980_v27 }
 0x1d6   : > { %1933 = vmatprep.mubr.f32.mxu0 %v965_v46  ;;  %1989 = vmatprep.mubr.f32.mxu1 %v981_v16  ;;  %v996_v46 = vld [vmem:[#allocation2 + $0x48] sm:$0xff] }
 0x1d7   : > { %v1012_v16 = vld [vmem:[#allocation2 + $0xc8] sm:$0xff] }
 0x1d9   : > { %1934 = vmatmul.mubr.f32.gmra.mrb[26].mxu0 %v966_v47  ;;  %1990 = vmatmul.mubr.f32.gmra.mrb[26].mxu1 %v982_v50  ;;  %v1011_v47 = vld [vmem:[#allocation2 + $0xc0] sm:$0xff] }
 0x1da   : > { %1936 = vmatprep.mubr.f32.mxu0 %v967_v51  ;;  %1992 = vmatprep.mubr.f32.mxu1 %v983_v53 }
 0x1dd   : > { %1937 = vmatmul.mubr.f32.gmra.mrb[28].mxu0 %v968_v44  ;;  %1993 = vmatmul.mubr.f32.gmra.mrb[28].mxu1 %v984_v54 }
 0x1de   : > { %1939 = vmatprep.mubr.f32.mxu0 %v969_v56  ;;  %1995 = vmatprep.mubr.f32.mxu1 %v985_v11  ;;  %v998_v56 = vld [vmem:[#allocation2 + $0x58] sm:$0xff] }
 0x1df   : > { %v1014_v11 = vld [vmem:[#allocation2 + $0xd8] sm:$0xff] }
 0x1e1   : > { %1940 = vmatmul.mubr.f32.gmra.mrb[30].mxu0 %v970_v57  ;;  %1996 = vmatmul.mubr.f32.gmra.mrb[30].mxu1 %v986_v59  ;;  %v997_v57 = vld [vmem:[#allocation2 + $0x50] sm:$0xff] }
 0x1e2   : > { %v1013_v59 = vld [vmem:[#allocation2 + $0xd0] sm:$0xff] }
 0x298   : > { %v1920_v1 = vpop.f32.mrb[16].mxu0  ;;  %v1976_v3 = vpop.f32.mrb[16].mxu1 }
 0x299   : > { %v1310_v4 = vadd.f32 %v1920_v1, %v988_v60  ;;  %v1326_v5 = vadd.f32 %v1976_v3, %v1004_v61  ;;  %v1085_v8 = vpop.f32.mrb[17].mxu0  ;;  %v1230_v9 = vpop.f32.mrb[17].mxu1 }
 0x29a   : > { %v1309_v10 = vadd.f32 %v1085_v8, %v987_v62  ;;  %v1325_v12 = vadd.f32 %v1230_v9, %v1003_v0  ;;  %v1000_v8 = vld [vmem:[#allocation2 + $0x68] sm:$0xff] }
 0x29b   : > { %1342 = vst [vmem:[#allocation2 + $0x8] sm:$0xff] %v1310_v4  ;;  %1358 = vst [vmem:[#allocation2 + $0x88] sm:$0xff] %v1326_v5  ;;  %v1016_v9 = vld [vmem:[#allocation2 + $0xe8] sm:$0xff] }
 0x29c   : > { %1341 = vst [vmem:[#allocation2] sm:$0xff] %v1309_v10  ;;  %1357 = vst [vmem:[#allocation2 + $0x80] sm:$0xff] %v1325_v12  ;;  %v1923_v13 = vpop.f32.mrb[18].mxu0  ;;  %v1979_v15 = vpop.f32.mrb[18].mxu1  ;;  %v999_v10 = vld [vmem:[#allocation2 + $0x60] sm:$0xff] }
 0x29d   : > { %v1312_v63 = vadd.f32 %v1923_v13, %v990_v29  ;;  %v1328_v17 = vadd.f32 %v1979_v15, %v1006_v48  ;;  %v1095_v19 = vpop.f32.mrb[19].mxu0  ;;  %v1240_v20 = vpop.f32.mrb[19].mxu1  ;;  %v1015_v12 = vld [vmem:[#allocation2 + $0xe0] sm:$0xff] }
 0x29e   : > { %v1311_v21 = vadd.f32 %v1095_v19, %v989_v14  ;;  %v1327_v23 = vadd.f32 %v1240_v20, %v1005_v38  ;;  %v1002_v19 = vld [vmem:[#allocation2 + $0x78] sm:$0xff] }
 0x29f   : > { %1344 = vst [vmem:[#allocation2 + $0x18] sm:$0xff] %v1312_v63  ;;  %1360 = vst [vmem:[#allocation2 + $0x98] sm:$0xff] %v1328_v17  ;;  %v1018_v20 = vld [vmem:[#allocation2 + $0xf8] sm:$0xff] }
 0x2a0   : > { %1343 = vst [vmem:[#allocation2 + $0x10] sm:$0xff] %v1311_v21  ;;  %1359 = vst [vmem:[#allocation2 + $0x90] sm:$0xff] %v1327_v23  ;;  %v1926_v35 = vpop.f32.mrb[20].mxu0  ;;  %v1982_v36 = vpop.f32.mrb[20].mxu1  ;;  %v1001_v21 = vld [vmem:[#allocation2 + $0x70] sm:$0xff] }
 0x2a1   : > { %v1314_v18 = vadd.f32 %v1926_v35, %v992_v25  ;;  %v1330_v24 = vadd.f32 %v1982_v36, %v1008_v30  ;;  %v1105_v37 = vpop.f32.mrb[21].mxu0  ;;  %v1250_v43 = vpop.f32.mrb[21].mxu1  ;;  %v1017_v23 = vld [vmem:[#allocation2 + $0xf0] sm:$0xff] }
 0x2a2   : > { %v1313_v28 = vadd.f32 %v1105_v37, %v991_v31  ;;  %v1329_v39 = vadd.f32 %v1250_v43, %v1007_v32  ;;  %v1378_v43 = vld [vmem:[#allocation2 + $0x8] sm:$0xff] (!%p1636_p9) }
 0x2a3   : > { %1346 = vst [vmem:[#allocation2 + $0x28] sm:$0xff] %v1314_v18  ;;  %1362 = vst [vmem:[#allocation2 + $0xa8] sm:$0xff] %v1330_v24  ;;  %v1377_v37 = vld [vmem:[#allocation2] sm:$0xff] (!%p1636_p9) }
 0x2a4   : > { %1345 = vst [vmem:[#allocation2 + $0x20] sm:$0xff] %v1313_v28  ;;  %1361 = vst [vmem:[#allocation2 + $0xa0] sm:$0xff] %v1329_v39  ;;  %v1929_v2 = vpop.f32.mrb[22].mxu0  ;;  %v1985_v42 = vpop.f32.mrb[22].mxu1 }
 0x2a5   : > { %v1316_v6 = vadd.f32 %v1929_v2, %v994_v33  ;;  %v1332_v45 = vadd.f32 %v1985_v42, %v1010_v40  ;;  %v1115_v52 = vpop.f32.mrb[23].mxu0  ;;  %v1260_v58 = vpop.f32.mrb[23].mxu1  ;;  %1409 = vst [vmem:[%s2741_s5] sm:$0xff] (!%p1636_p9), %v1377_v37  ;;  %1410 = vst [vmem:[%s2741_s5 + $0x8] sm:$0xff] (!%p1636_p9), %v1378_v43 }
 0x2a6   : > { %v1315_v27 = vadd.f32 %v1115_v52, %v993_v26  ;;  %v1331_v34 = vadd.f32 %v1260_v58, %v1009_v7  ;;  %v1380_v39 = vld [vmem:[#allocation2 + $0x18] sm:$0xff] (!%p1636_p9) }
 0x2a7   : > { %1348 = vst [vmem:[#allocation2 + $0x38] sm:$0xff] %v1316_v6  ;;  %1364 = vst [vmem:[#allocation2 + $0xb8] sm:$0xff] %v1332_v45  ;;  %v1379_v28 = vld [vmem:[#allocation2 + $0x10] sm:$0xff] (!%p1636_p9) }
 0x2a8   : > { %1347 = vst [vmem:[#allocation2 + $0x30] sm:$0xff] %v1315_v27  ;;  %1363 = vst [vmem:[#allocation2 + $0xb0] sm:$0xff] %v1331_v34  ;;  %v1932_v50 = vpop.f32.mrb[24].mxu0  ;;  %v1988_v49 = vpop.f32.mrb[24].mxu1 }
 0x2a9   : > { %v1318_v51 = vadd.f32 %v1932_v50, %v996_v46  ;;  %v1334_v53 = vadd.f32 %v1988_v49, %v1012_v16  ;;  %v1125_v41 = vpop.f32.mrb[25].mxu0  ;;  %v1270_v44 = vpop.f32.mrb[25].mxu1  ;;  %1411 = vst [vmem:[%s2741_s5 + $0x10] sm:$0xff] (!%p1636_p9), %v1379_v28  ;;  %1412 = vst [vmem:[%s2741_s5 + $0x18] sm:$0xff] (!%p1636_p9), %v1380_v39  ;;  %v1393_v46 = vld [vmem:[#allocation2 + $0x80] sm:$0xff] (!%p1636_p9)  ;;  %v1394_v16 = vld [vmem:[#allocation2 + $0x88] sm:$0xff] (!%p1636_p9) }
 0x2aa   : > { %v1317_v54 = vadd.f32 %v1125_v41, %v995_v22  ;;  %v1333_v55 = vadd.f32 %v1270_v44, %v1011_v47  ;;  %v1382_v40 = vld [vmem:[#allocation2 + $0x28] sm:$0xff] (!%p1636_p9)  ;;  %1425 = vst [vmem:[%s2741_s5 + $0x80] sm:$0xff] (!%p1636_p9), %v1393_v46  ;;  %1426 = vst [vmem:[%s2741_s5 + $0x88] sm:$0xff] (!%p1636_p9), %v1394_v16  ;;  %v1395_v22 = vld [vmem:[#allocation2 + $0x90] sm:$0xff] (!%p1636_p9) }
 0x2ab   : > { %1350 = vst [vmem:[#allocation2 + $0x48] sm:$0xff] %v1318_v51  ;;  %1366 = vst [vmem:[#allocation2 + $0xc8] sm:$0xff] %v1334_v53  ;;  %v1381_v33 = vld [vmem:[#allocation2 + $0x20] sm:$0xff] (!%p1636_p9)  ;;  %v1396_v47 = vld [vmem:[#allocation2 + $0x98] sm:$0xff] (!%p1636_p9) }
 0x2ac   : > { %1349 = vst [vmem:[#allocation2 + $0x40] sm:$0xff] %v1317_v54  ;;  %1365 = vst [vmem:[#allocation2 + $0xc0] sm:$0xff] %v1333_v55  ;;  %v1935_v60 = vpop.f32.mrb[26].mxu0  ;;  %v1991_v61 = vpop.f32.mrb[26].mxu1  ;;  %v1397_v50 = vld [vmem:[#allocation2 + $0xa0] sm:$0xff] (!%p1636_p9)  ;;  %v1398_v49 = vld [vmem:[#allocation2 + $0xa8] sm:$0xff] (!%p1636_p9) }
 0x2ad   : > { %v1320_v62 = vadd.f32 %v1935_v60, %v998_v56  ;;  %v1336_v0 = vadd.f32 %v1991_v61, %v1014_v11  ;;  %v1135_v1 = vpop.f32.mrb[27].mxu0  ;;  %v1280_v3 = vpop.f32.mrb[27].mxu1  ;;  %1413 = vst [vmem:[%s2741_s5 + $0x20] sm:$0xff] (!%p1636_p9), %v1381_v33  ;;  %1414 = vst [vmem:[%s2741_s5 + $0x28] sm:$0xff] (!%p1636_p9), %v1382_v40 }
 0x2ae   : > { %v1319_v4 = vadd.f32 %v1135_v1, %v997_v57  ;;  %v1335_v5 = vadd.f32 %v1280_v3, %v1013_v59  ;;  %v1384_v7 = vld [vmem:[#allocation2 + $0x38] sm:$0xff] (!%p1636_p9)  ;;  %1427 = vst [vmem:[%s2741_s5 + $0x90] sm:$0xff] (!%p1636_p9), %v1395_v22  ;;  %1428 = vst [vmem:[%s2741_s5 + $0x98] sm:$0xff] (!%p1636_p9), %v1396_v47 }
 0x2af   : > { %1352 = vst [vmem:[#allocation2 + $0x58] sm:$0xff] %v1320_v62  ;;  %1368 = vst [vmem:[#allocation2 + $0xd8] sm:$0xff] %v1336_v0  ;;  %v1383_v26 = vld [vmem:[#allocation2 + $0x30] sm:$0xff] (!%p1636_p9)  ;;  %v1400_v53 = vld [vmem:[#allocation2 + $0xb8] sm:$0xff] (!%p1636_p9) }
 0x2b0   : > { %1351 = vst [vmem:[#allocation2 + $0x50] sm:$0xff] %v1319_v4  ;;  %1367 = vst [vmem:[#allocation2 + $0xd0] sm:$0xff] %v1335_v5  ;;  %v1938_v29 = vpop.f32.mrb[28].mxu0  ;;  %v1994_v48 = vpop.f32.mrb[28].mxu1  ;;  %v1399_v51 = vld [vmem:[#allocation2 + $0xb0] sm:$0xff] (!%p1636_p9) }
 0x2b1   : > { %v1322_v14 = vadd.f32 %v1938_v29, %v1000_v8  ;;  %v1338_v38 = vadd.f32 %v1994_v48, %v1016_v9  ;;  %v1145_v13 = vpop.f32.mrb[29].mxu0  ;;  %v1290_v15 = vpop.f32.mrb[29].mxu1  ;;  %1415 = vst [vmem:[%s2741_s5 + $0x30] sm:$0xff] (!%p1636_p9), %v1383_v26  ;;  %1416 = vst [vmem:[%s2741_s5 + $0x38] sm:$0xff] (!%p1636_p9), %v1384_v7 }
 0x2b2   : > { %v1321_v63 = vadd.f32 %v1145_v13, %v999_v10  ;;  %v1337_v17 = vadd.f32 %v1290_v15, %v1015_v12  ;;  %1376 = sbr.rel (%p1636_p9) target bundleno = 706 (0x2c2), region = 52  ;;  %v1386_v42 = vld [vmem:[#allocation2 + $0x48] sm:$0xff] (!%p1636_p9)  ;;  %1429 = vst [vmem:[%s2741_s5 + $0xa0] sm:$0xff] (!%p1636_p9), %v1397_v50  ;;  %1430 = vst [vmem:[%s2741_s5 + $0xa8] sm:$0xff] (!%p1636_p9), %v1398_v49 }
 0x2b3   : > { %1354 = vst [vmem:[#allocation2 + $0x68] sm:$0xff] %v1322_v14  ;;  %1370 = vst [vmem:[#allocation2 + $0xe8] sm:$0xff] %v1338_v38  ;;  %v1385_v2 = vld [vmem:[#allocation2 + $0x40] sm:$0xff] (!%p1636_p9)  ;;  %v1402_v44 = vld [vmem:[#allocation2 + $0xc8] sm:$0xff] (!%p1636_p9) }
 0x2b4   : > { %1353 = vst [vmem:[#allocation2 + $0x60] sm:$0xff] %v1321_v63  ;;  %1369 = vst [vmem:[#allocation2 + $0xe0] sm:$0xff] %v1337_v17  ;;  %v1941_v25 = vpop.f32.mrb[30].mxu0  ;;  %v1997_v30 = vpop.f32.mrb[30].mxu1  ;;  %v1401_v41 = vld [vmem:[#allocation2 + $0xc0] sm:$0xff] (!%p1636_p9) }
 0x2b5   : > { %v1324_v31 = vadd.f32 %v1941_v25, %v1002_v19  ;;  %v1340_v32 = vadd.f32 %v1997_v30, %v1018_v20  ;;  %v1155_v35 = vpop.f32.mrb[31].mxu0  ;;  %v1300_v36 = vpop.f32.mrb[31].mxu1  ;;  %1417 = vst [vmem:[%s2741_s5 + $0x40] sm:$0xff] (!%p1636_p9), %v1385_v2  ;;  %1418 = vst [vmem:[%s2741_s5 + $0x48] sm:$0xff] (!%p1636_p9), %v1386_v42 }
 0x2b6   : > { %v1323_v18 = vadd.f32 %v1155_v35, %v1001_v21  ;;  %v1339_v24 = vadd.f32 %v1300_v36, %v1017_v23  ;;  %v1388_v45 = vld [vmem:[#allocation2 + $0x58] sm:$0xff] (!%p1636_p9)  ;;  %1431 = vst [vmem:[%s2741_s5 + $0xb0] sm:$0xff] (!%p1636_p9), %v1399_v51  ;;  %1432 = vst [vmem:[%s2741_s5 + $0xb8] sm:$0xff] (!%p1636_p9), %v1400_v53 }
 0x2b7   : > { %1356 = vst [vmem:[#allocation2 + $0x78] sm:$0xff] %v1324_v31  ;;  %1372 = vst [vmem:[#allocation2 + $0xf8] sm:$0xff] %v1340_v32  ;;  %v1387_v6 = vld [vmem:[#allocation2 + $0x50] sm:$0xff] (!%p1636_p9)  ;;  %v1404_v55 = vld [vmem:[#allocation2 + $0xd8] sm:$0xff] (!%p1636_p9) }
 0x2b8   : > { %1355 = vst [vmem:[#allocation2 + $0x70] sm:$0xff] %v1323_v18  ;;  %1371 = vst [vmem:[#allocation2 + $0xf0] sm:$0xff] %v1339_v24  ;;  %v1403_v54 = vld [vmem:[#allocation2 + $0xd0] sm:$0xff] (!%p1636_p9) }
 0x2b9   : > { %1419 = vst [vmem:[%s2741_s5 + $0x50] sm:$0xff] %v1387_v6  ;;  %1420 = vst [vmem:[%s2741_s5 + $0x58] sm:$0xff] %v1388_v45 }
 0x2ba   : > { %v1390_v58 = vld [vmem:[#allocation2 + $0x68] sm:$0xff]  ;;  %1433 = vst [vmem:[%s2741_s5 + $0xc0] sm:$0xff] %v1401_v41  ;;  %1434 = vst [vmem:[%s2741_s5 + $0xc8] sm:$0xff] %v1402_v44 }
 0x2bb   : > { %v1389_v52 = vld [vmem:[#allocation2 + $0x60] sm:$0xff]  ;;  %1422 = vst [vmem:[%s2741_s5 + $0x68] sm:$0xff] %v1390_v58  ;;  %1435 = vst [vmem:[%s2741_s5 + $0xd0] sm:$0xff] %v1403_v54  ;;  %v1406_v11 = vld [vmem:[#allocation2 + $0xe8] sm:$0xff] }
 0x2bc   : > { %1421 = vst [vmem:[%s2741_s5 + $0x60] sm:$0xff] %v1389_v52  ;;  %v1405_v56 = vld [vmem:[#allocation2 + $0xe0] sm:$0xff]  ;;  %1436 = vst [vmem:[%s2741_s5 + $0xd8] sm:$0xff] %v1404_v55 }
 0x2bd   : > { %1437 = vst [vmem:[%s2741_s5 + $0xe0] sm:$0xff] %v1405_v56  ;;  %1438 = vst [vmem:[%s2741_s5 + $0xe8] sm:$0xff] %v1406_v11 }
 0x2be   : > { %v1392_v34 = vld [vmem:[#allocation2 + $0x78] sm:$0xff] }
 0x2bf   : > { %v1391_v27 = vld [vmem:[#allocation2 + $0x70] sm:$0xff]  ;;  %1424 = vst [vmem:[%s2741_s5 + $0x78] sm:$0xff] %v1392_v34  ;;  %v1408_v59 = vld [vmem:[#allocation2 + $0xf8] sm:$0xff] }
 0x2c0   : > { %1423 = vst [vmem:[%s2741_s5 + $0x70] sm:$0xff] %v1391_v27  ;;  %v1407_v57 = vld [vmem:[#allocation2 + $0xf0] sm:$0xff]  ;;  %1440 = vst [vmem:[%s2741_s5 + $0xf8] sm:$0xff] %v1408_v59 }
 0x2c1   : > { %1439 = vst [vmem:[%s2741_s5 + $0xf0] sm:$0xff] %v1407_v57 }
 0x2c2 PF: > { %s1442_s18 = scalar_lea.sflag [#allocation5], %s2721_s25 }
 0x2c3   : > { %s1645_s23 = sshll.u32 %s2462_s19, 11  ;;  %s1471_s4 = sshll.u32 %s2741_s5, 4  ;;  %s1472_s4 = int_to_ptr.vmem [resolvable:$true] %s1471_s4 }
 0x2c4   : > { %s1454_s6 = scalar_lea.hbm %s3079_s3, %s1645_s23  ;;  %s2495_s15 = smov 2048  }
 0x2c5   : > { %2153 = sst [smem:[#allocation17]] (%p2644_p4), %s2495_s15  ;;  %s2496_s7 = smov 4096  }
 0x2c6   : > { %2154 = sst [smem:[#allocation17 + $0x1]] (%p2644_p4), %s2496_s7  ;;  %s2497_s27 = smov 16  }
 0x2c7   : > { %2155 = sst [smem:[#allocation17 + $0x2]] (%p2644_p4), %s2497_s27  ;;  %s2498_s25 = smov 128  }
 0x2c8   : > { %2156 = sst [smem:[#allocation17 + $0x3]] (%p2644_p4), %s2498_s25  ;;  %s2499_s19 = smov 8  }
 0x2c9   : > { %2157 = sst [smem:[#allocation17 + $0x4]] (%p2644_p4), %s2498_s25  ;;  %s2500_s24 = smov [#allocation16]  }
 0x2ca   : > { %2158 = sst [smem:[#allocation17 + $0x5]] (%p2644_p4), %s2499_s19  ;;  %s2501_s29 = smov 0  }
 0x2cb   : > { %2159 = dma.general (%p2644_p4), %s1472_s4, 4096, %s1454_s6, %s1442_s18, %s2500_s24, [#allocation17], %s2501_s29, 0  }
 0x2cc PF: > { %s3102_s21 = sld [smem:[#allocation24_spill]]  ;;  %p2165_p11 = scmp.ge.s32.totalorder %s2474_s22, 2 }
 0x2ce   : > { %p2162_p12 = pnand %p2165_p11, %p2651_p10 }
 0x2d2   : > { %s1499_s28 = sand.u32 1, %s3102_s21  }
 0x2d3   : > { %s1500_s26 = scalar_lea.sflag [#allocation5], %s1499_s28 }
 0x2d4   : > { %2429 = dma.done.wait (!%p2162_p12), %s1500_s26, 4096  }
 0x2d5   : > { %2431 = vsyncadd (!%p2162_p12), %s1500_s26, 4294963200  ;;  %s22_s22 = sadd.s32 1, %s2474_s22   ;;  %s3104_s11 = sld [smem:[#allocation29_spill]] }
 0x2d6   : > { %p19_p13 = scmp.ge.s32.totalorder %s22_s22, 6   ;;  %s3105_s10 = sld [smem:[#allocation25_spill]] }
 0x2d7   : > { %s3106_s17 = sld [smem:[#allocation30_spill]]  ;;  %s3107_s19 = sld [smem:[#allocation26_spill]] }
 0x2d8   : > { %s3108_s5 = sld [smem:[#allocation27_spill]]  ;;  %s3109_s21 = sld [smem:[#allocation28_spill]] }
 0x2d9   : > { %s3110_s12 = smov %s2438_s13  ;;  %s3111_s13 = smov %s2442_s14 }
 0x2da   : > { %s3113_s15 = smov %s2450_s16  ;;  %s3115_s18 = smov %s2466_s20 }
 0x2db   : > { %s3112_s14 = smov %s3104_s11  ;;  %21 = sbr.rel (!%p19_p13) target bundleno = 11 (0xb), region = 129 }
 0x2dc   : > { %s3114_s16 = smov %s3105_s10 }
 0x2de   : > { %s3116_s20 = smov %s3108_s5 }
 0x2e2   :  { %1505 = vsyncpa [#allocation4], 1 }
 0x2e3   :  { %1507 = vsyncpa [#allocation4 + $0x1], 1 }
 0x2e4   :  { %1508 = vsyncpa [#allocation7], 1 }
 0x2e5   :  { %1510 = vsyncpa [#allocation7 + $0x1], 1 }
 0x2e6   :  { %1511 = vsyncpa [#allocation5], 1 }
 0x2e7   :  { %1513 = vsyncpa [#allocation5 + $0x1], 1 }

</bundles_post_ra>
